<compile_context>
chip_gen: v6e
topology: v6e:2x2x1
jax: 0.10.0
libtpu: 0.0.40
codegen_flags: <defaults>
</compile_context>

<pallas_src>
import math

import jax
import jax.numpy as jnp
from jax import lax
from jax.experimental import pallas as pl
from jax.experimental.pallas import tpu as pltpu


# ------------------------------ Pallas kernel ------------------------------ #

def _make_fused_kernel(num_layers, T, BP, H):
    """Fused bidirectional multi-layer LSTM.

    Positional refs:
      refs[0]                   x2d    (T*BP, 2*F0)  row-block t = [x(t) | x(T-1-t)]
      refs[1 + 3*l + {0,1,2}]   w_ih_m (2*F_l, 8H), w_hh_m (2H, 8H), b_m (1, 8H)
      refs[1 + 3*L]             out    (BP, 2*L*H)
      trailing scratch          gx (T*BP, 8H), seq (T*BP, 4H)

    Merged gate column order everywhere: [i_f, i_r, f_f, f_r, o_f, o_r, g_f, g_r]
    (each block H lanes), so sigmoid covers lanes 0:6H and tanh covers 6H:8H.
    gx row-block t holds forward gates for time t AND reverse gates for time
    T-1-t, so each recurrent step is: one aligned (BP,8H) read, one
    (BP,2H)@(2H,8H) block-diagonal dot, two EUP pushes, full-width VPU math.
    """
    H2, H4, H6, H8 = 2 * H, 4 * H, 6 * H, 8 * H

    def kernel(*refs):
        x_ref = refs[0]
        w_refs = refs[1:1 + 3 * num_layers]
        out_ref = refs[1 + 3 * num_layers]
        gx_scr, seq_scr = refs[2 + 3 * num_layers:]

        finals = []
        for l in range(num_layers):
            w_ih, w_hh, b = w_refs[3 * l:3 * l + 3]

            # Hoisted input projection for ALL timesteps and BOTH directions:
            # one MXU matmul + bias, one lane-dense (T*BP, 8H) store.
            xin = x_ref[...] if l == 0 else seq_scr[...]
            gx_scr[...] = (jnp.dot(xin, w_ih[...],
                                   preferred_element_type=jnp.float32)
                           + b[...])

            whh = w_hh[...]                        # (2H, 8H) block-diagonal
            h = jnp.zeros((BP, H2), jnp.float32)   # [h_fwd | h_rev]
            c = jnp.zeros((BP, H2), jnp.float32)
            last_layer = (l + 1 == num_layers)

            # Fully unrolled static time loop (T is small here).  For large T
            # this would become a lax.fori_loop with the same tile-aligned
            # scratch layout.
            for t in range(T):
                tr = T - 1 - t

                # Single aligned gate read + single recurrent matmul per step.
                g = gx_scr[t * BP:(t + 1) * BP, :] + jnp.dot(
                    h, whh, preferred_element_type=jnp.float32)    # (BP, 8H)

                sig = jax.nn.sigmoid(g[:, 0:H6])    # i|f|o lanes only (1 push)
                i_g = sig[:, 0:H2]
                f_g = sig[:, H2:H4]
                o_g = sig[:, H4:H6]
                g_g = jnp.tanh(g[:, H6:H8])         # g lanes only     (1 push)

                c = f_g * c + i_g * g_g             # (BP, 2H), both directions
                h = o_g * jnp.tanh(c)

                if not last_layer:
                    # Next layer's input row-block r = [in(r) | in(T-1-r)] with
                    # in(s) = [h_f(s), h_r(s)].  These stores are off the
                    # recurrence critical path (store slots have slack).
                    seq_scr[t * BP:(t + 1) * BP, 0:H] = h[:, 0:H]          # h_f(t)
                    seq_scr[tr * BP:(tr + 1) * BP, H2:H2 + H] = h[:, 0:H]  # h_f(t) rev-slot
                    seq_scr[tr * BP:(tr + 1) * BP, H:H2] = h[:, H:H2]      # h_r(tr)
                    seq_scr[t * BP:(t + 1) * BP, H2 + H:H4] = h[:, H:H2]   # h_r(tr) rev-slot

            finals.append(h[:, 0:H])    # forward final hidden (time T-1)
            finals.append(h[:, H:H2])   # reverse final hidden (time 0)

        # Single lane-dense output store (BP, 2*L*H).
        out_ref[...] = jnp.concatenate(finals, axis=1)

    return kernel


# -------------------------------- Parameters -------------------------------- #

def init_params(key, text_size, face_size, hidden_size, num_layers):
    """Raw nn.LSTM-layout params, uniform(-1/sqrt(H), 1/sqrt(H))."""
    H = hidden_size
    bound = 1.0 / math.sqrt(H)
    in_size = text_size + face_size
    params = []
    for l in range(num_layers):
        layer_in = in_size if l == 0 else 2 * H
        layer = {}
        for tag in ("f", "r"):     # forward / reverse direction
            key, k1, k2, k3, k4 = jax.random.split(key, 5)
            layer["w_ih_" + tag] = jax.random.uniform(
                k1, (4 * H, layer_in), jnp.float32, -bound, bound)
            layer["w_hh_" + tag] = jax.random.uniform(
                k2, (4 * H, H), jnp.float32, -bound, bound)
            layer["b_ih_" + tag] = jax.random.uniform(
                k3, (4 * H,), jnp.float32, -bound, bound)
            layer["b_hh_" + tag] = jax.random.uniform(
                k4, (4 * H,), jnp.float32, -bound, bound)
        params.append(layer)
    return params


def _gate_cols(w):
    """(4H, F) torch-layout weight -> (F, H) column blocks (i, f, g, o)."""
    H = w.shape[0] // 4
    wt = jnp.transpose(w)
    return wt[:, 0:H], wt[:, H:2 * H], wt[:, 2 * H:3 * H], wt[:, 3 * H:4 * H]


def prep_kernel_weights(params, hidden_size):
    """Build the merged kernel weights (done once, outside the kernel).

    Per layer (merged gate column order [i_f,i_r,f_f,f_r,o_f,o_r,g_f,g_r]):
      w_ih_m (2*F_l, 8H): rows 0:F_l act on the time-ordered input and feed the
        forward gate columns; rows F_l:2F_l act on the time-reversed input and
        feed the reverse gate columns.
      w_hh_m (2H, 8H): block-diagonal diag(w_hh_f, w_hh_r).
      b_m    (1, 8H):  b_ih + b_hh.
    """
    H = hidden_size
    out = []
    for p in params:
        i_f, f_f, g_f, o_f = _gate_cols(p["w_ih_f"])
        i_r, f_r, g_r, o_r = _gate_cols(p["w_ih_r"])
        Fl = p["w_ih_f"].shape[1]
        Z = jnp.zeros((Fl, H), jnp.float32)
        w_ih_m = jnp.concatenate([
            jnp.concatenate([i_f, Z, f_f, Z, o_f, Z, g_f, Z], axis=1),
            jnp.concatenate([Z, i_r, Z, f_r, Z, o_r, Z, g_r], axis=1)], axis=0)

        hi_f, hf_f, hg_f, ho_f = _gate_cols(p["w_hh_f"])
        hi_r, hf_r, hg_r, ho_r = _gate_cols(p["w_hh_r"])
        Zh = jnp.zeros((H, H), jnp.float32)
        w_hh_m = jnp.concatenate([
            jnp.concatenate([hi_f, Zh, hf_f, Zh, ho_f, Zh, hg_f, Zh], axis=1),
            jnp.concatenate([Zh, hi_r, Zh, hf_r, Zh, ho_r, Zh, hg_r], axis=1)],
            axis=0)

        bf = p["b_ih_f"] + p["b_hh_f"]
        br = p["b_ih_r"] + p["b_hh_r"]

        def blk(b, k):
            return b[k * H:(k + 1) * H]

        b_m = jnp.concatenate(
            [blk(bf, 0), blk(br, 0), blk(bf, 1), blk(br, 1),
             blk(bf, 3), blk(br, 3), blk(bf, 2), blk(br, 2)])[None, :]
        out.append((w_ih_m, w_hh_m, b_m))
    return out


# ------------------------------- Forward pass -------------------------------- #

def history_encoder_forward(params, x, y, hidden_size, num_layers):
    """Equivalent of History_Encoder.forward.

    x: (B, T, text_size), y: (B, T, face_size) -> (B, 1, num_layers*2*hidden_size)
    """
    B, T, _ = x.shape
    assert x.shape[0] == y.shape[0]
    H = hidden_size
    BP = ((B + 7) // 8) * 8                    # pad batch to the 8-sublane tile

    feat = jnp.concatenate([x, y], axis=2).astype(jnp.float32)    # (B, T, F0)
    F0 = feat.shape[2]
    x_tm = jnp.transpose(feat, (1, 0, 2))                         # (T, B, F0)
    x_tm = jnp.pad(x_tm, ((0, 0), (0, BP - B), (0, 0)))           # (T, BP, F0)
    # Row-block t of the kernel input = [x(t) | x(T-1-t)] so one matmul yields
    # forward gates(t) and reverse gates(T-1-t) in the same row.
    x_both = jnp.concatenate([x_tm, jnp.flip(x_tm, axis=0)], axis=2)
    x2d = jnp.reshape(x_both, (T * BP, 2 * F0))

    kweights = prep_kernel_weights(params, H)
    inputs = [x2d]
    for w_ih_m, w_hh_m, b_m in kweights:
        inputs += [w_ih_m, w_hh_m, b_m]

    # Explicit VMEM budget (v7x: 64 MiB physical / 32 MiB default scoped).
    # For non-toy T/B/H this kernel would switch to a time-chunked pipeline
    # with per-layer weight streaming instead of whole-sequence residency.
    n_elems = (int(x2d.size)
               + sum(int(w.size) for trip in kweights for w in trip)
               + BP * 2 * num_layers * H          # output
               + T * BP * 8 * H                   # hoisted-gates scratch
               + T * BP * 4 * H)                  # inter-layer sequence scratch
    vmem_limit = int(max(4 * 1024 * 1024, 2 * 4 * n_elems))

    vmem = pl.BlockSpec(memory_space=pltpu.MemorySpace.VMEM)
    kernel = _make_fused_kernel(num_layers, T, BP, H)

    h_cat = pl.pallas_call(
        kernel,
        out_shape=jax.ShapeDtypeStruct((BP, 2 * num_layers * H), jnp.float32),
        in_specs=[vmem] * len(inputs),
        out_specs=vmem,
        scratch_shapes=[
            pltpu.VMEM((T * BP, 8 * H), jnp.float32),   # hoisted gates (both dirs)
            pltpu.VMEM((T * BP, 4 * H), jnp.float32),   # inter-layer sequence
        ],
        compiler_params=pltpu.CompilerParams(vmem_limit_bytes=vmem_limit),
    )(*inputs)

    return jnp.reshape(h_cat[:B], (B, 1, 2 * num_layers * H))


# ----------------------------- Pure-JAX reference ---------------------------- #

def _lstm_dir_ref(x_tbf, w_ih, w_hh, b_ih, b_hh):
    H = w_hh.shape[1]
    B = x_tbf.shape[1]
    w_ih_t = w_ih.T
    w_hh_t = w_hh.T
    b = (b_ih + b_hh)[None, :]

    def step(carry, x_t):
        h, c = carry
        gates = x_t @ w_ih_t + h @ w_hh_t + b
        i = jax.nn.sigmoid(gates[:, 0:H])
        f = jax.nn.sigmoid(gates[:, H:2 * H])
        g = jnp.tanh(gates[:, 2 * H:3 * H])
        o = jax.nn.sigmoid(gates[:, 3 * H:4 * H])
        c = f * c + i * g
        h = o * jnp.tanh(c)
        return (h, c), h

    init = (jnp.zeros((B, H), jnp.float32), jnp.zeros((B, H), jnp.float32))
    (h, _), out = lax.scan(step, init, x_tbf)
    return out, h


def history_encoder_ref(params, x, y, hidden_size, num_layers):
    B = x.shape[0]
    seq = jnp.transpose(jnp.concatenate([x, y], axis=2), (1, 0, 2))   # (T, B, F)
    h_list = []
    for l in range(num_layers):
        p = params[l]
        out_f, h_f = _lstm_dir_ref(seq, p["w_ih_f"], p["w_hh_f"],
                                   p["b_ih_f"], p["b_hh_f"])
        out_r, h_r = _lstm_dir_ref(jnp.flip(seq, axis=0), p["w_ih_r"],
                                   p["w_hh_r"], p["b_ih_r"], p["b_hh_r"])
        seq = jnp.concatenate([out_f, jnp.flip(out_r, axis=0)], axis=-1)
        h_list.extend([h_f, h_r])
    h = jnp.transpose(jnp.stack(h_list, axis=0), (1, 0, 2))           # (B, 2L, H)
    return jnp.reshape(h, (B, 1, -1))


# ----------------------------------- Main ------------------------------------ #

if __name__ == "__main__":
    text_size, face_size = 12, 20
    hidden_size, num_layers = 32, 2
    B, T = 2, 8

    key = jax.random.PRNGKey(0)
    k_p, k_x, k_y = jax.random.split(key, 3)
    params = init_params(k_p, text_size, face_size, hidden_size, num_layers)
    x = jax.random.normal(k_x, (B, T, text_size), dtype=jnp.float32)
    y = jax.random.normal(k_y, (B, T, face_size), dtype=jnp.float32)

    h = history_encoder_forward(params, x, y, hidden_size, num_layers)
    h = jax.block_until_ready(h)

    h_ref = history_encoder_ref(params, x, y, hidden_size, num_layers)

    assert h.shape == (B, 1, num_layers * 2 * hidden_size), h.shape
    assert jnp.allclose(h, h_ref, atol=1e-4, rtol=1e-4), \
        float(jnp.max(jnp.abs(h - h_ref)))

    print("KERNEL_OK")
</pallas_src>

<mosaic_0001>
module attributes {stable_mosaic.version = 11 : i64} {
  func.func @kernel(%arg0: memref<64x64xf32, #tpu.memory_space<vmem>>, %arg1: memref<64x256xf32, #tpu.memory_space<vmem>>, %arg2: memref<64x256xf32, #tpu.memory_space<vmem>>, %arg3: memref<1x256xf32, #tpu.memory_space<vmem>>, %arg4: memref<128x256xf32, #tpu.memory_space<vmem>>, %arg5: memref<64x256xf32, #tpu.memory_space<vmem>>, %arg6: memref<1x256xf32, #tpu.memory_space<vmem>>, %arg7: memref<8x128xf32, #tpu.memory_space<vmem>>, %arg8: memref<64x256xf32, #tpu.memory_space<vmem>>, %arg9: memref<64x128xf32, #tpu.memory_space<vmem>>) attributes {dimension_semantics = [], scalar_prefetch = 0 : i64, scratch_operands = 2 : i64, tpu.core_type = #tpu.core_type<tc>} {
    %c0 = arith.constant 0 : index
    %c0_0 = arith.constant 0 : index
    %0 = vector.load %arg0[%c0, %c0_0] : memref<64x64xf32, #tpu.memory_space<vmem>>, vector<64x64xf32>
    %c0_1 = arith.constant 0 : index
    %c0_2 = arith.constant 0 : index
    %1 = vector.load %arg1[%c0_1, %c0_2] : memref<64x256xf32, #tpu.memory_space<vmem>>, vector<64x256xf32>
    %cst = arith.constant dense<0.000000e+00> : vector<64x256xf32>
    %2 = tpu.matmul %0, %1, %cst {dimension_numbers = #tpu.dot_dimension_numbers<[1], [0], [0], [1], [0, 0, 1, 1], [], []>} : vector<64x64xf32>, vector<64x256xf32>, vector<64x256xf32> -> vector<64x256xf32>
    %c0_3 = arith.constant 0 : index
    %c0_4 = arith.constant 0 : index
    %3 = vector.load %arg3[%c0_3, %c0_4] : memref<1x256xf32, #tpu.memory_space<vmem>>, vector<1x256xf32>
    %4 = vector.broadcast %3 : vector<1x256xf32> to vector<64x256xf32>
    %5 = arith.addf %2, %4 : vector<64x256xf32>
    %c0_5 = arith.constant 0 : index
    %c0_6 = arith.constant 0 : index
    %6 = vector.load %arg8[%c0_5, %c0_6] : memref<64x256xf32, #tpu.memory_space<vmem>>, vector<64x256xf32>
    tpu.vector_store %arg8[%c0_5, %c0_6], %5 {strides = array<i32>} : memref<64x256xf32, #tpu.memory_space<vmem>>, vector<64x256xf32>,
    %c0_7 = arith.constant 0 : index
    %c0_8 = arith.constant 0 : index
    %7 = vector.load %arg2[%c0_7, %c0_8] : memref<64x256xf32, #tpu.memory_space<vmem>>, vector<64x256xf32>
    %cst_9 = arith.constant 0.000000e+00 : f32
    %8 = vector.broadcast %cst_9 : f32 to vector<8x64xf32>
    %cst_10 = arith.constant 0.000000e+00 : f32
    %9 = vector.broadcast %cst_10 : f32 to vector<8x64xf32>
    %c0_11 = arith.constant 0 : index
    %c0_12 = arith.constant 0 : index
    %10 = vector.load %arg8[%c0_11, %c0_12] : memref<64x256xf32, #tpu.memory_space<vmem>>, vector<8x256xf32>
    %cst_13 = arith.constant dense<0.000000e+00> : vector<8x256xf32>
    %11 = tpu.matmul %8, %7, %cst_13 {dimension_numbers = #tpu.dot_dimension_numbers<[1], [0], [0], [1], [0, 0, 1, 1], [], []>} : vector<8x64xf32>, vector<64x256xf32>, vector<8x256xf32> -> vector<8x256xf32>
    %12 = arith.addf %10, %11 : vector<8x256xf32>
    %13 = vector.extract_strided_slice %12 {offsets = [0, 0], sizes = [8, 192], strides = [1, 1]} : vector<8x256xf32> to vector<8x192xf32>
    %14 = arith.negf %13 : vector<8x192xf32>
    %15 = math.exp %14 : vector<8x192xf32>
    %cst_14 = arith.constant 1.000000e+00 : f32
    %16 = vector.broadcast %cst_14 : f32 to vector<8x192xf32>
    %17 = arith.addf %16, %15 : vector<8x192xf32>
    %18 = arith.divf %16, %17 : vector<8x192xf32>
    %19 = vector.extract_strided_slice %18 {offsets = [0, 0], sizes = [8, 64], strides = [1, 1]} : vector<8x192xf32> to vector<8x64xf32>
    %20 = vector.extract_strided_slice %18 {offsets = [0, 64], sizes = [8, 64], strides = [1, 1]} : vector<8x192xf32> to vector<8x64xf32>
    %21 = vector.extract_strided_slice %18 {offsets = [0, 128], sizes = [8, 64], strides = [1, 1]} : vector<8x192xf32> to vector<8x64xf32>
    %22 = vector.extract_strided_slice %12 {offsets = [0, 192], sizes = [8, 64], strides = [1, 1]} : vector<8x256xf32> to vector<8x64xf32>
    %23 = math.tanh %22 : vector<8x64xf32>
    %24 = arith.mulf %20, %9 : vector<8x64xf32>
    %25 = arith.mulf %19, %23 : vector<8x64xf32>
    %26 = arith.addf %24, %25 : vector<8x64xf32>
    %27 = math.tanh %26 : vector<8x64xf32>
    %28 = arith.mulf %21, %27 : vector<8x64xf32>
    %29 = vector.extract_strided_slice %28 {offsets = [0, 0], sizes = [8, 32], strides = [1, 1]} : vector<8x64xf32> to vector<8x32xf32>
    %c0_15 = arith.constant 0 : index
    %c0_16 = arith.constant 0 : index
    %30 = vector.load %arg9[%c0_15, %c0_16] : memref<64x128xf32, #tpu.memory_space<vmem>>, vector<8x32xf32>
    tpu.vector_store %arg9[%c0_15, %c0_16], %29 {strides = array<i32>} : memref<64x128xf32, #tpu.memory_space<vmem>>, vector<8x32xf32>,
    %31 = vector.extract_strided_slice %28 {offsets = [0, 0], sizes = [8, 32], strides = [1, 1]} : vector<8x64xf32> to vector<8x32xf32>
    %c56 = arith.constant 56 : index
    %c64 = arith.constant 64 : index
    %32 = vector.load %arg9[%c56, %c64] : memref<64x128xf32, #tpu.memory_space<vmem>>, vector<8x32xf32>
    tpu.vector_store %arg9[%c56, %c64], %31 {strides = array<i32>} : memref<64x128xf32, #tpu.memory_space<vmem>>, vector<8x32xf32>,
    %33 = vector.extract_strided_slice %28 {offsets = [0, 32], sizes = [8, 32], strides = [1, 1]} : vector<8x64xf32> to vector<8x32xf32>
    %c56_17 = arith.constant 56 : index
    %c32 = arith.constant 32 : index
    %34 = vector.load %arg9[%c56_17, %c32] : memref<64x128xf32, #tpu.memory_space<vmem>>, vector<8x32xf32>
    tpu.vector_store %arg9[%c56_17, %c32], %33 {strides = array<i32>} : memref<64x128xf32, #tpu.memory_space<vmem>>, vector<8x32xf32>,
    %35 = vector.extract_strided_slice %28 {offsets = [0, 32], sizes = [8, 32], strides = [1, 1]} : vector<8x64xf32> to vector<8x32xf32>
    %c0_18 = arith.constant 0 : index
    %c96 = arith.constant 96 : index
    %36 = vector.load %arg9[%c0_18, %c96] : memref<64x128xf32, #tpu.memory_space<vmem>>, vector<8x32xf32>
    tpu.vector_store %arg9[%c0_18, %c96], %35 {strides = array<i32>} : memref<64x128xf32, #tpu.memory_space<vmem>>, vector<8x32xf32>,
    %c8 = arith.constant 8 : index
    %c0_19 = arith.constant 0 : index
    %37 = vector.load %arg8[%c8, %c0_19] : memref<64x256xf32, #tpu.memory_space<vmem>>, vector<8x256xf32>
    %cst_20 = arith.constant dense<0.000000e+00> : vector<8x256xf32>
    %38 = tpu.matmul %28, %7, %cst_20 {dimension_numbers = #tpu.dot_dimension_numbers<[1], [0], [0], [1], [0, 0, 1, 1], [], []>} : vector<8x64xf32>, vector<64x256xf32>, vector<8x256xf32> -> vector<8x256xf32>
    %39 = arith.addf %37, %38 : vector<8x256xf32>
    %40 = vector.extract_strided_slice %39 {offsets = [0, 0], sizes = [8, 192], strides = [1, 1]} : vector<8x256xf32> to vector<8x192xf32>
    %41 = arith.negf %40 : vector<8x192xf32>
    %42 = math.exp %41 : vector<8x192xf32>
    %cst_21 = arith.constant 1.000000e+00 : f32
    %43 = vector.broadcast %cst_21 : f32 to vector<8x192xf32>
    %44 = arith.addf %43, %42 : vector<8x192xf32>
    %45 = arith.divf %43, %44 : vector<8x192xf32>
    %46 = vector.extract_strided_slice %45 {offsets = [0, 0], sizes = [8, 64], strides = [1, 1]} : vector<8x192xf32> to vector<8x64xf32>
    %47 = vector.extract_strided_slice %45 {offsets = [0, 64], sizes = [8, 64], strides = [1, 1]} : vector<8x192xf32> to vector<8x64xf32>
    %48 = vector.extract_strided_slice %45 {offsets = [0, 128], sizes = [8, 64], strides = [1, 1]} : vector<8x192xf32> to vector<8x64xf32>
    %49 = vector.extract_strided_slice %39 {offsets = [0, 192], sizes = [8, 64], strides = [1, 1]} : vector<8x256xf32> to vector<8x64xf32>
    %50 = math.tanh %49 : vector<8x64xf32>
    %51 = arith.mulf %47, %26 : vector<8x64xf32>
    %52 = arith.mulf %46, %50 : vector<8x64xf32>
    %53 = arith.addf %51, %52 : vector<8x64xf32>
    %54 = math.tanh %53 : vector<8x64xf32>
    %55 = arith.mulf %48, %54 : vector<8x64xf32>
    %56 = vector.extract_strided_slice %55 {offsets = [0, 0], sizes = [8, 32], strides = [1, 1]} : vector<8x64xf32> to vector<8x32xf32>
    %c8_22 = arith.constant 8 : index
    %c0_23 = arith.constant 0 : index
    %57 = vector.load %arg9[%c8_22, %c0_23] : memref<64x128xf32, #tpu.memory_space<vmem>>, vector<8x32xf32>
    tpu.vector_store %arg9[%c8_22, %c0_23], %56 {strides = array<i32>} : memref<64x128xf32, #tpu.memory_space<vmem>>, vector<8x32xf32>,
    %58 = vector.extract_strided_slice %55 {offsets = [0, 0], sizes = [8, 32], strides = [1, 1]} : vector<8x64xf32> to vector<8x32xf32>
    %c48 = arith.constant 48 : index
    %c64_24 = arith.constant 64 : index
    %59 = vector.load %arg9[%c48, %c64_24] : memref<64x128xf32, #tpu.memory_space<vmem>>, vector<8x32xf32>
    tpu.vector_store %arg9[%c48, %c64_24], %58 {strides = array<i32>} : memref<64x128xf32, #tpu.memory_space<vmem>>, vector<8x32xf32>,
    %60 = vector.extract_strided_slice %55 {offsets = [0, 32], sizes = [8, 32], strides = [1, 1]} : vector<8x64xf32> to vector<8x32xf32>
    %c48_25 = arith.constant 48 : index
    %c32_26 = arith.constant 32 : index
    %61 = vector.load %arg9[%c48_25, %c32_26] : memref<64x128xf32, #tpu.memory_space<vmem>>, vector<8x32xf32>
    tpu.vector_store %arg9[%c48_25, %c32_26], %60 {strides = array<i32>} : memref<64x128xf32, #tpu.memory_space<vmem>>, vector<8x32xf32>,
    %62 = vector.extract_strided_slice %55 {offsets = [0, 32], sizes = [8, 32], strides = [1, 1]} : vector<8x64xf32> to vector<8x32xf32>
    %c8_27 = arith.constant 8 : index
    %c96_28 = arith.constant 96 : index
    %63 = vector.load %arg9[%c8_27, %c96_28] : memref<64x128xf32, #tpu.memory_space<vmem>>, vector<8x32xf32>
    tpu.vector_store %arg9[%c8_27, %c96_28], %62 {strides = array<i32>} : memref<64x128xf32, #tpu.memory_space<vmem>>, vector<8x32xf32>,
    %c16 = arith.constant 16 : index
    %c0_29 = arith.constant 0 : index
    %64 = vector.load %arg8[%c16, %c0_29] : memref<64x256xf32, #tpu.memory_space<vmem>>, vector<8x256xf32>
    %cst_30 = arith.constant dense<0.000000e+00> : vector<8x256xf32>
    %65 = tpu.matmul %55, %7, %cst_30 {dimension_numbers = #tpu.dot_dimension_numbers<[1], [0], [0], [1], [0, 0, 1, 1], [], []>} : vector<8x64xf32>, vector<64x256xf32>, vector<8x256xf32> -> vector<8x256xf32>
    %66 = arith.addf %64, %65 : vector<8x256xf32>
    %67 = vector.extract_strided_slice %66 {offsets = [0, 0], sizes = [8, 192], strides = [1, 1]} : vector<8x256xf32> to vector<8x192xf32>
    %68 = arith.negf %67 : vector<8x192xf32>
    %69 = math.exp %68 : vector<8x192xf32>
    %cst_31 = arith.constant 1.000000e+00 : f32
    %70 = vector.broadcast %cst_31 : f32 to vector<8x192xf32>
    %71 = arith.addf %70, %69 : vector<8x192xf32>
    %72 = arith.divf %70, %71 : vector<8x192xf32>
    %73 = vector.extract_strided_slice %72 {offsets = [0, 0], sizes = [8, 64], strides = [1, 1]} : vector<8x192xf32> to vector<8x64xf32>
    %74 = vector.extract_strided_slice %72 {offsets = [0, 64], sizes = [8, 64], strides = [1, 1]} : vector<8x192xf32> to vector<8x64xf32>
    %75 = vector.extract_strided_slice %72 {offsets = [0, 128], sizes = [8, 64], strides = [1, 1]} : vector<8x192xf32> to vector<8x64xf32>
    %76 = vector.extract_strided_slice %66 {offsets = [0, 192], sizes = [8, 64], strides = [1, 1]} : vector<8x256xf32> to vector<8x64xf32>
    %77 = math.tanh %76 : vector<8x64xf32>
    %78 = arith.mulf %74, %53 : vector<8x64xf32>
    %79 = arith.mulf %73, %77 : vector<8x64xf32>
    %80 = arith.addf %78, %79 : vector<8x64xf32>
    %81 = math.tanh %80 : vector<8x64xf32>
    %82 = arith.mulf %75, %81 : vector<8x64xf32>
    %83 = vector.extract_strided_slice %82 {offsets = [0, 0], sizes = [8, 32], strides = [1, 1]} : vector<8x64xf32> to vector<8x32xf32>
    %c16_32 = arith.constant 16 : index
    %c0_33 = arith.constant 0 : index
    %84 = vector.load %arg9[%c16_32, %c0_33] : memref<64x128xf32, #tpu.memory_space<vmem>>, vector<8x32xf32>
    tpu.vector_store %arg9[%c16_32, %c0_33], %83 {strides = array<i32>} : memref<64x128xf32, #tpu.memory_space<vmem>>, vector<8x32xf32>,
    %85 = vector.extract_strided_slice %82 {offsets = [0, 0], sizes = [8, 32], strides = [1, 1]} : vector<8x64xf32> to vector<8x32xf32>
    %c40 = arith.constant 40 : index
    %c64_34 = arith.constant 64 : index
    %86 = vector.load %arg9[%c40, %c64_34] : memref<64x128xf32, #tpu.memory_space<vmem>>, vector<8x32xf32>
    tpu.vector_store %arg9[%c40, %c64_34], %85 {strides = array<i32>} : memref<64x128xf32, #tpu.memory_space<vmem>>, vector<8x32xf32>,
    %87 = vector.extract_strided_slice %82 {offsets = [0, 32], sizes = [8, 32], strides = [1, 1]} : vector<8x64xf32> to vector<8x32xf32>
    %c40_35 = arith.constant 40 : index
    %c32_36 = arith.constant 32 : index
    %88 = vector.load %arg9[%c40_35, %c32_36] : memref<64x128xf32, #tpu.memory_space<vmem>>, vector<8x32xf32>
    tpu.vector_store %arg9[%c40_35, %c32_36], %87 {strides = array<i32>} : memref<64x128xf32, #tpu.memory_space<vmem>>, vector<8x32xf32>,
    %89 = vector.extract_strided_slice %82 {offsets = [0, 32], sizes = [8, 32], strides = [1, 1]} : vector<8x64xf32> to vector<8x32xf32>
    %c16_37 = arith.constant 16 : index
    %c96_38 = arith.constant 96 : index
    %90 = vector.load %arg9[%c16_37, %c96_38] : memref<64x128xf32, #tpu.memory_space<vmem>>, vector<8x32xf32>
    tpu.vector_store %arg9[%c16_37, %c96_38], %89 {strides = array<i32>} : memref<64x128xf32, #tpu.memory_space<vmem>>, vector<8x32xf32>,
    %c24 = arith.constant 24 : index
    %c0_39 = arith.constant 0 : index
    %91 = vector.load %arg8[%c24, %c0_39] : memref<64x256xf32, #tpu.memory_space<vmem>>, vector<8x256xf32>
    %cst_40 = arith.constant dense<0.000000e+00> : vector<8x256xf32>
    %92 = tpu.matmul %82, %7, %cst_40 {dimension_numbers = #tpu.dot_dimension_numbers<[1], [0], [0], [1], [0, 0, 1, 1], [], []>} : vector<8x64xf32>, vector<64x256xf32>, vector<8x256xf32> -> vector<8x256xf32>
    %93 = arith.addf %91, %92 : vector<8x256xf32>
    %94 = vector.extract_strided_slice %93 {offsets = [0, 0], sizes = [8, 192], strides = [1, 1]} : vector<8x256xf32> to vector<8x192xf32>
    %95 = arith.negf %94 : vector<8x192xf32>
    %96 = math.exp %95 : vector<8x192xf32>
    %cst_41 = arith.constant 1.000000e+00 : f32
    %97 = vector.broadcast %cst_41 : f32 to vector<8x192xf32>
    %98 = arith.addf %97, %96 : vector<8x192xf32>
    %99 = arith.divf %97, %98 : vector<8x192xf32>
    %100 = vector.extract_strided_slice %99 {offsets = [0, 0], sizes = [8, 64], strides = [1, 1]} : vector<8x192xf32> to vector<8x64xf32>
    %101 = vector.extract_strided_slice %99 {offsets = [0, 64], sizes = [8, 64], strides = [1, 1]} : vector<8x192xf32> to vector<8x64xf32>
    %102 = vector.extract_strided_slice %99 {offsets = [0, 128], sizes = [8, 64], strides = [1, 1]} : vector<8x192xf32> to vector<8x64xf32>
    %103 = vector.extract_strided_slice %93 {offsets = [0, 192], sizes = [8, 64], strides = [1, 1]} : vector<8x256xf32> to vector<8x64xf32>
    %104 = math.tanh %103 : vector<8x64xf32>
    %105 = arith.mulf %101, %80 : vector<8x64xf32>
    %106 = arith.mulf %100, %104 : vector<8x64xf32>
    %107 = arith.addf %105, %106 : vector<8x64xf32>
    %108 = math.tanh %107 : vector<8x64xf32>
    %109 = arith.mulf %102, %108 : vector<8x64xf32>
    %110 = vector.extract_strided_slice %109 {offsets = [0, 0], sizes = [8, 32], strides = [1, 1]} : vector<8x64xf32> to vector<8x32xf32>
    %c24_42 = arith.constant 24 : index
    %c0_43 = arith.constant 0 : index
    %111 = vector.load %arg9[%c24_42, %c0_43] : memref<64x128xf32, #tpu.memory_space<vmem>>, vector<8x32xf32>
    tpu.vector_store %arg9[%c24_42, %c0_43], %110 {strides = array<i32>} : memref<64x128xf32, #tpu.memory_space<vmem>>, vector<8x32xf32>,
    %112 = vector.extract_strided_slice %109 {offsets = [0, 0], sizes = [8, 32], strides = [1, 1]} : vector<8x64xf32> to vector<8x32xf32>
    %c32_44 = arith.constant 32 : index
    %c64_45 = arith.constant 64 : index
    %113 = vector.load %arg9[%c32_44, %c64_45] : memref<64x128xf32, #tpu.memory_space<vmem>>, vector<8x32xf32>
    tpu.vector_store %arg9[%c32_44, %c64_45], %112 {strides = array<i32>} : memref<64x128xf32, #tpu.memory_space<vmem>>, vector<8x32xf32>,
    %114 = vector.extract_strided_slice %109 {offsets = [0, 32], sizes = [8, 32], strides = [1, 1]} : vector<8x64xf32> to vector<8x32xf32>
    %c32_46 = arith.constant 32 : index
    %c32_47 = arith.constant 32 : index
    %115 = vector.load %arg9[%c32_46, %c32_47] : memref<64x128xf32, #tpu.memory_space<vmem>>, vector<8x32xf32>
    tpu.vector_store %arg9[%c32_46, %c32_47], %114 {strides = array<i32>} : memref<64x128xf32, #tpu.memory_space<vmem>>, vector<8x32xf32>,
    %116 = vector.extract_strided_slice %109 {offsets = [0, 32], sizes = [8, 32], strides = [1, 1]} : vector<8x64xf32> to vector<8x32xf32>
    %c24_48 = arith.constant 24 : index
    %c96_49 = arith.constant 96 : index
    %117 = vector.load %arg9[%c24_48, %c96_49] : memref<64x128xf32, #tpu.memory_space<vmem>>, vector<8x32xf32>
    tpu.vector_store %arg9[%c24_48, %c96_49], %116 {strides = array<i32>} : memref<64x128xf32, #tpu.memory_space<vmem>>, vector<8x32xf32>,
    %c32_50 = arith.constant 32 : index
    %c0_51 = arith.constant 0 : index
    %118 = vector.load %arg8[%c32_50, %c0_51] : memref<64x256xf32, #tpu.memory_space<vmem>>, vector<8x256xf32>
    %cst_52 = arith.constant dense<0.000000e+00> : vector<8x256xf32>
    %119 = tpu.matmul %109, %7, %cst_52 {dimension_numbers = #tpu.dot_dimension_numbers<[1], [0], [0], [1], [0, 0, 1, 1], [], []>} : vector<8x64xf32>, vector<64x256xf32>, vector<8x256xf32> -> vector<8x256xf32>
    %120 = arith.addf %118, %119 : vector<8x256xf32>
    %121 = vector.extract_strided_slice %120 {offsets = [0, 0], sizes = [8, 192], strides = [1, 1]} : vector<8x256xf32> to vector<8x192xf32>
    %122 = arith.negf %121 : vector<8x192xf32>
    %123 = math.exp %122 : vector<8x192xf32>
    %cst_53 = arith.constant 1.000000e+00 : f32
    %124 = vector.broadcast %cst_53 : f32 to vector<8x192xf32>
    %125 = arith.addf %124, %123 : vector<8x192xf32>
    %126 = arith.divf %124, %125 : vector<8x192xf32>
    %127 = vector.extract_strided_slice %126 {offsets = [0, 0], sizes = [8, 64], strides = [1, 1]} : vector<8x192xf32> to vector<8x64xf32>
    %128 = vector.extract_strided_slice %126 {offsets = [0, 64], sizes = [8, 64], strides = [1, 1]} : vector<8x192xf32> to vector<8x64xf32>
    %129 = vector.extract_strided_slice %126 {offsets = [0, 128], sizes = [8, 64], strides = [1, 1]} : vector<8x192xf32> to vector<8x64xf32>
    %130 = vector.extract_strided_slice %120 {offsets = [0, 192], sizes = [8, 64], strides = [1, 1]} : vector<8x256xf32> to vector<8x64xf32>
    %131 = math.tanh %130 : vector<8x64xf32>
    %132 = arith.mulf %128, %107 : vector<8x64xf32>
    %133 = arith.mulf %127, %131 : vector<8x64xf32>
    %134 = arith.addf %132, %133 : vector<8x64xf32>
    %135 = math.tanh %134 : vector<8x64xf32>
    %136 = arith.mulf %129, %135 : vector<8x64xf32>
    %137 = vector.extract_strided_slice %136 {offsets = [0, 0], sizes = [8, 32], strides = [1, 1]} : vector<8x64xf32> to vector<8x32xf32>
    %c32_54 = arith.constant 32 : index
    %c0_55 = arith.constant 0 : index
    %138 = vector.load %arg9[%c32_54, %c0_55] : memref<64x128xf32, #tpu.memory_space<vmem>>, vector<8x32xf32>
    tpu.vector_store %arg9[%c32_54, %c0_55], %137 {strides = array<i32>} : memref<64x128xf32, #tpu.memory_space<vmem>>, vector<8x32xf32>,
    %139 = vector.extract_strided_slice %136 {offsets = [0, 0], sizes = [8, 32], strides = [1, 1]} : vector<8x64xf32> to vector<8x32xf32>
    %c24_56 = arith.constant 24 : index
    %c64_57 = arith.constant 64 : index
    %140 = vector.load %arg9[%c24_56, %c64_57] : memref<64x128xf32, #tpu.memory_space<vmem>>, vector<8x32xf32>
    tpu.vector_store %arg9[%c24_56, %c64_57], %139 {strides = array<i32>} : memref<64x128xf32, #tpu.memory_space<vmem>>, vector<8x32xf32>,
    %141 = vector.extract_strided_slice %136 {offsets = [0, 32], sizes = [8, 32], strides = [1, 1]} : vector<8x64xf32> to vector<8x32xf32>
    %c24_58 = arith.constant 24 : index
    %c32_59 = arith.constant 32 : index
    %142 = vector.load %arg9[%c24_58, %c32_59] : memref<64x128xf32, #tpu.memory_space<vmem>>, vector<8x32xf32>
    tpu.vector_store %arg9[%c24_58, %c32_59], %141 {strides = array<i32>} : memref<64x128xf32, #tpu.memory_space<vmem>>, vector<8x32xf32>,
    %143 = vector.extract_strided_slice %136 {offsets = [0, 32], sizes = [8, 32], strides = [1, 1]} : vector<8x64xf32> to vector<8x32xf32>
    %c32_60 = arith.constant 32 : index
    %c96_61 = arith.constant 96 : index
    %144 = vector.load %arg9[%c32_60, %c96_61] : memref<64x128xf32, #tpu.memory_space<vmem>>, vector<8x32xf32>
    tpu.vector_store %arg9[%c32_60, %c96_61], %143 {strides = array<i32>} : memref<64x128xf32, #tpu.memory_space<vmem>>, vector<8x32xf32>,
    %c40_62 = arith.constant 40 : index
    %c0_63 = arith.constant 0 : index
    %145 = vector.load %arg8[%c40_62, %c0_63] : memref<64x256xf32, #tpu.memory_space<vmem>>, vector<8x256xf32>
    %cst_64 = arith.constant dense<0.000000e+00> : vector<8x256xf32>
    %146 = tpu.matmul %136, %7, %cst_64 {dimension_numbers = #tpu.dot_dimension_numbers<[1], [0], [0], [1], [0, 0, 1, 1], [], []>} : vector<8x64xf32>, vector<64x256xf32>, vector<8x256xf32> -> vector<8x256xf32>
    %147 = arith.addf %145, %146 : vector<8x256xf32>
    %148 = vector.extract_strided_slice %147 {offsets = [0, 0], sizes = [8, 192], strides = [1, 1]} : vector<8x256xf32> to vector<8x192xf32>
    %149 = arith.negf %148 : vector<8x192xf32>
    %150 = math.exp %149 : vector<8x192xf32>
    %cst_65 = arith.constant 1.000000e+00 : f32
    %151 = vector.broadcast %cst_65 : f32 to vector<8x192xf32>
    %152 = arith.addf %151, %150 : vector<8x192xf32>
    %153 = arith.divf %151, %152 : vector<8x192xf32>
    %154 = vector.extract_strided_slice %153 {offsets = [0, 0], sizes = [8, 64], strides = [1, 1]} : vector<8x192xf32> to vector<8x64xf32>
    %155 = vector.extract_strided_slice %153 {offsets = [0, 64], sizes = [8, 64], strides = [1, 1]} : vector<8x192xf32> to vector<8x64xf32>
    %156 = vector.extract_strided_slice %153 {offsets = [0, 128], sizes = [8, 64], strides = [1, 1]} : vector<8x192xf32> to vector<8x64xf32>
    %157 = vector.extract_strided_slice %147 {offsets = [0, 192], sizes = [8, 64], strides = [1, 1]} : vector<8x256xf32> to vector<8x64xf32>
    %158 = math.tanh %157 : vector<8x64xf32>
    %159 = arith.mulf %155, %134 : vector<8x64xf32>
    %160 = arith.mulf %154, %158 : vector<8x64xf32>
    %161 = arith.addf %159, %160 : vector<8x64xf32>
    %162 = math.tanh %161 : vector<8x64xf32>
    %163 = arith.mulf %156, %162 : vector<8x64xf32>
    %164 = vector.extract_strided_slice %163 {offsets = [0, 0], sizes = [8, 32], strides = [1, 1]} : vector<8x64xf32> to vector<8x32xf32>
    %c40_66 = arith.constant 40 : index
    %c0_67 = arith.constant 0 : index
    %165 = vector.load %arg9[%c40_66, %c0_67] : memref<64x128xf32, #tpu.memory_space<vmem>>, vector<8x32xf32>
    tpu.vector_store %arg9[%c40_66, %c0_67], %164 {strides = array<i32>} : memref<64x128xf32, #tpu.memory_space<vmem>>, vector<8x32xf32>,
    %166 = vector.extract_strided_slice %163 {offsets = [0, 0], sizes = [8, 32], strides = [1, 1]} : vector<8x64xf32> to vector<8x32xf32>
    %c16_68 = arith.constant 16 : index
    %c64_69 = arith.constant 64 : index
    %167 = vector.load %arg9[%c16_68, %c64_69] : memref<64x128xf32, #tpu.memory_space<vmem>>, vector<8x32xf32>
    tpu.vector_store %arg9[%c16_68, %c64_69], %166 {strides = array<i32>} : memref<64x128xf32, #tpu.memory_space<vmem>>, vector<8x32xf32>,
    %168 = vector.extract_strided_slice %163 {offsets = [0, 32], sizes = [8, 32], strides = [1, 1]} : vector<8x64xf32> to vector<8x32xf32>
    %c16_70 = arith.constant 16 : index
    %c32_71 = arith.constant 32 : index
    %169 = vector.load %arg9[%c16_70, %c32_71] : memref<64x128xf32, #tpu.memory_space<vmem>>, vector<8x32xf32>
    tpu.vector_store %arg9[%c16_70, %c32_71], %168 {strides = array<i32>} : memref<64x128xf32, #tpu.memory_space<vmem>>, vector<8x32xf32>,
    %170 = vector.extract_strided_slice %163 {offsets = [0, 32], sizes = [8, 32], strides = [1, 1]} : vector<8x64xf32> to vector<8x32xf32>
    %c40_72 = arith.constant 40 : index
    %c96_73 = arith.constant 96 : index
    %171 = vector.load %arg9[%c40_72, %c96_73] : memref<64x128xf32, #tpu.memory_space<vmem>>, vector<8x32xf32>
    tpu.vector_store %arg9[%c40_72, %c96_73], %170 {strides = array<i32>} : memref<64x128xf32, #tpu.memory_space<vmem>>, vector<8x32xf32>,
    %c48_74 = arith.constant 48 : index
    %c0_75 = arith.constant 0 : index
    %172 = vector.load %arg8[%c48_74, %c0_75] : memref<64x256xf32, #tpu.memory_space<vmem>>, vector<8x256xf32>
    %cst_76 = arith.constant dense<0.000000e+00> : vector<8x256xf32>
    %173 = tpu.matmul %163, %7, %cst_76 {dimension_numbers = #tpu.dot_dimension_numbers<[1], [0], [0], [1], [0, 0, 1, 1], [], []>} : vector<8x64xf32>, vector<64x256xf32>, vector<8x256xf32> -> vector<8x256xf32>
    %174 = arith.addf %172, %173 : vector<8x256xf32>
    %175 = vector.extract_strided_slice %174 {offsets = [0, 0], sizes = [8, 192], strides = [1, 1]} : vector<8x256xf32> to vector<8x192xf32>
    %176 = arith.negf %175 : vector<8x192xf32>
    %177 = math.exp %176 : vector<8x192xf32>
    %cst_77 = arith.constant 1.000000e+00 : f32
    %178 = vector.broadcast %cst_77 : f32 to vector<8x192xf32>
    %179 = arith.addf %178, %177 : vector<8x192xf32>
    %180 = arith.divf %178, %179 : vector<8x192xf32>
    %181 = vector.extract_strided_slice %180 {offsets = [0, 0], sizes = [8, 64], strides = [1, 1]} : vector<8x192xf32> to vector<8x64xf32>
    %182 = vector.extract_strided_slice %180 {offsets = [0, 64], sizes = [8, 64], strides = [1, 1]} : vector<8x192xf32> to vector<8x64xf32>
    %183 = vector.extract_strided_slice %180 {offsets = [0, 128], sizes = [8, 64], strides = [1, 1]} : vector<8x192xf32> to vector<8x64xf32>
    %184 = vector.extract_strided_slice %174 {offsets = [0, 192], sizes = [8, 64], strides = [1, 1]} : vector<8x256xf32> to vector<8x64xf32>
    %185 = math.tanh %184 : vector<8x64xf32>
    %186 = arith.mulf %182, %161 : vector<8x64xf32>
    %187 = arith.mulf %181, %185 : vector<8x64xf32>
    %188 = arith.addf %186, %187 : vector<8x64xf32>
    %189 = math.tanh %188 : vector<8x64xf32>
    %190 = arith.mulf %183, %189 : vector<8x64xf32>
    %191 = vector.extract_strided_slice %190 {offsets = [0, 0], sizes = [8, 32], strides = [1, 1]} : vector<8x64xf32> to vector<8x32xf32>
    %c48_78 = arith.constant 48 : index
    %c0_79 = arith.constant 0 : index
    %192 = vector.load %arg9[%c48_78, %c0_79] : memref<64x128xf32, #tpu.memory_space<vmem>>, vector<8x32xf32>
    tpu.vector_store %arg9[%c48_78, %c0_79], %191 {strides = array<i32>} : memref<64x128xf32, #tpu.memory_space<vmem>>, vector<8x32xf32>,
    %193 = vector.extract_strided_slice %190 {offsets = [0, 0], sizes = [8, 32], strides = [1, 1]} : vector<8x64xf32> to vector<8x32xf32>
    %c8_80 = arith.constant 8 : index
    %c64_81 = arith.constant 64 : index
    %194 = vector.load %arg9[%c8_80, %c64_81] : memref<64x128xf32, #tpu.memory_space<vmem>>, vector<8x32xf32>
    tpu.vector_store %arg9[%c8_80, %c64_81], %193 {strides = array<i32>} : memref<64x128xf32, #tpu.memory_space<vmem>>, vector<8x32xf32>,
    %195 = vector.extract_strided_slice %190 {offsets = [0, 32], sizes = [8, 32], strides = [1, 1]} : vector<8x64xf32> to vector<8x32xf32>
    %c8_82 = arith.constant 8 : index
    %c32_83 = arith.constant 32 : index
    %196 = vector.load %arg9[%c8_82, %c32_83] : memref<64x128xf32, #tpu.memory_space<vmem>>, vector<8x32xf32>
    tpu.vector_store %arg9[%c8_82, %c32_83], %195 {strides = array<i32>} : memref<64x128xf32, #tpu.memory_space<vmem>>, vector<8x32xf32>,
    %197 = vector.extract_strided_slice %190 {offsets = [0, 32], sizes = [8, 32], strides = [1, 1]} : vector<8x64xf32> to vector<8x32xf32>
    %c48_84 = arith.constant 48 : index
    %c96_85 = arith.constant 96 : index
    %198 = vector.load %arg9[%c48_84, %c96_85] : memref<64x128xf32, #tpu.memory_space<vmem>>, vector<8x32xf32>
    tpu.vector_store %arg9[%c48_84, %c96_85], %197 {strides = array<i32>} : memref<64x128xf32, #tpu.memory_space<vmem>>, vector<8x32xf32>,
    %c56_86 = arith.constant 56 : index
    %c0_87 = arith.constant 0 : index
    %199 = vector.load %arg8[%c56_86, %c0_87] : memref<64x256xf32, #tpu.memory_space<vmem>>, vector<8x256xf32>
    %cst_88 = arith.constant dense<0.000000e+00> : vector<8x256xf32>
    %200 = tpu.matmul %190, %7, %cst_88 {dimension_numbers = #tpu.dot_dimension_numbers<[1], [0], [0], [1], [0, 0, 1, 1], [], []>} : vector<8x64xf32>, vector<64x256xf32>, vector<8x256xf32> -> vector<8x256xf32>
    %201 = arith.addf %199, %200 : vector<8x256xf32>
    %202 = vector.extract_strided_slice %201 {offsets = [0, 0], sizes = [8, 192], strides = [1, 1]} : vector<8x256xf32> to vector<8x192xf32>
    %203 = arith.negf %202 : vector<8x192xf32>
    %204 = math.exp %203 : vector<8x192xf32>
    %cst_89 = arith.constant 1.000000e+00 : f32
    %205 = vector.broadcast %cst_89 : f32 to vector<8x192xf32>
    %206 = arith.addf %205, %204 : vector<8x192xf32>
    %207 = arith.divf %205, %206 : vector<8x192xf32>
    %208 = vector.extract_strided_slice %207 {offsets = [0, 0], sizes = [8, 64], strides = [1, 1]} : vector<8x192xf32> to vector<8x64xf32>
    %209 = vector.extract_strided_slice %207 {offsets = [0, 64], sizes = [8, 64], strides = [1, 1]} : vector<8x192xf32> to vector<8x64xf32>
    %210 = vector.extract_strided_slice %207 {offsets = [0, 128], sizes = [8, 64], strides = [1, 1]} : vector<8x192xf32> to vector<8x64xf32>
    %211 = vector.extract_strided_slice %201 {offsets = [0, 192], sizes = [8, 64], strides = [1, 1]} : vector<8x256xf32> to vector<8x64xf32>
    %212 = math.tanh %211 : vector<8x64xf32>
    %213 = arith.mulf %209, %188 : vector<8x64xf32>
    %214 = arith.mulf %208, %212 : vector<8x64xf32>
    %215 = arith.addf %213, %214 : vector<8x64xf32>
    %216 = math.tanh %215 : vector<8x64xf32>
    %217 = arith.mulf %210, %216 : vector<8x64xf32>
    %218 = vector.extract_strided_slice %217 {offsets = [0, 0], sizes = [8, 32], strides = [1, 1]} : vector<8x64xf32> to vector<8x32xf32>
    %c56_90 = arith.constant 56 : index
    %c0_91 = arith.constant 0 : index
    %219 = vector.load %arg9[%c56_90, %c0_91] : memref<64x128xf32, #tpu.memory_space<vmem>>, vector<8x32xf32>
    tpu.vector_store %arg9[%c56_90, %c0_91], %218 {strides = array<i32>} : memref<64x128xf32, #tpu.memory_space<vmem>>, vector<8x32xf32>,
    %220 = vector.extract_strided_slice %217 {offsets = [0, 0], sizes = [8, 32], strides = [1, 1]} : vector<8x64xf32> to vector<8x32xf32>
    %c0_92 = arith.constant 0 : index
    %c64_93 = arith.constant 64 : index
    %221 = vector.load %arg9[%c0_92, %c64_93] : memref<64x128xf32, #tpu.memory_space<vmem>>, vector<8x32xf32>
    tpu.vector_store %arg9[%c0_92, %c64_93], %220 {strides = array<i32>} : memref<64x128xf32, #tpu.memory_space<vmem>>, vector<8x32xf32>,
    %222 = vector.extract_strided_slice %217 {offsets = [0, 32], sizes = [8, 32], strides = [1, 1]} : vector<8x64xf32> to vector<8x32xf32>
    %c0_94 = arith.constant 0 : index
    %c32_95 = arith.constant 32 : index
    %223 = vector.load %arg9[%c0_94, %c32_95] : memref<64x128xf32, #tpu.memory_space<vmem>>, vector<8x32xf32>
    tpu.vector_store %arg9[%c0_94, %c32_95], %222 {strides = array<i32>} : memref<64x128xf32, #tpu.memory_space<vmem>>, vector<8x32xf32>,
    %224 = vector.extract_strided_slice %217 {offsets = [0, 32], sizes = [8, 32], strides = [1, 1]} : vector<8x64xf32> to vector<8x32xf32>
    %c56_96 = arith.constant 56 : index
    %c96_97 = arith.constant 96 : index
    %225 = vector.load %arg9[%c56_96, %c96_97] : memref<64x128xf32, #tpu.memory_space<vmem>>, vector<8x32xf32>
    tpu.vector_store %arg9[%c56_96, %c96_97], %224 {strides = array<i32>} : memref<64x128xf32, #tpu.memory_space<vmem>>, vector<8x32xf32>,
    %226 = vector.extract_strided_slice %217 {offsets = [0, 0], sizes = [8, 32], strides = [1, 1]} : vector<8x64xf32> to vector<8x32xf32>
    %227 = vector.extract_strided_slice %217 {offsets = [0, 32], sizes = [8, 32], strides = [1, 1]} : vector<8x64xf32> to vector<8x32xf32>
    %c0_98 = arith.constant 0 : index
    %c0_99 = arith.constant 0 : index
    %228 = vector.load %arg9[%c0_98, %c0_99] : memref<64x128xf32, #tpu.memory_space<vmem>>, vector<64x128xf32>
    %c0_100 = arith.constant 0 : index
    %c0_101 = arith.constant 0 : index
    %229 = vector.load %arg4[%c0_100, %c0_101] : memref<128x256xf32, #tpu.memory_space<vmem>>, vector<128x256xf32>
    %cst_102 = arith.constant dense<0.000000e+00> : vector<64x256xf32>
    %230 = tpu.matmul %228, %229, %cst_102 {dimension_numbers = #tpu.dot_dimension_numbers<[1], [0], [0], [1], [0, 0, 1, 1], [], []>} : vector<64x128xf32>, vector<128x256xf32>, vector<64x256xf32> -> vector<64x256xf32>
    %c0_103 = arith.constant 0 : index
    %c0_104 = arith.constant 0 : index
    %231 = vector.load %arg6[%c0_103, %c0_104] : memref<1x256xf32, #tpu.memory_space<vmem>>, vector<1x256xf32>
    %232 = vector.broadcast %231 : vector<1x256xf32> to vector<64x256xf32>
    %233 = arith.addf %230, %232 : vector<64x256xf32>
    %c0_105 = arith.constant 0 : index
    %c0_106 = arith.constant 0 : index
    %234 = vector.load %arg8[%c0_105, %c0_106] : memref<64x256xf32, #tpu.memory_space<vmem>>, vector<64x256xf32>
    tpu.vector_store %arg8[%c0_105, %c0_106], %233 {strides = array<i32>} : memref<64x256xf32, #tpu.memory_space<vmem>>, vector<64x256xf32>,
    %c0_107 = arith.constant 0 : index
    %c0_108 = arith.constant 0 : index
    %235 = vector.load %arg5[%c0_107, %c0_108] : memref<64x256xf32, #tpu.memory_space<vmem>>, vector<64x256xf32>
    %cst_109 = arith.constant 0.000000e+00 : f32
    %236 = vector.broadcast %cst_109 : f32 to vector<8x64xf32>
    %cst_110 = arith.constant 0.000000e+00 : f32
    %237 = vector.broadcast %cst_110 : f32 to vector<8x64xf32>
    %c0_111 = arith.constant 0 : index
    %c0_112 = arith.constant 0 : index
    %238 = vector.load %arg8[%c0_111, %c0_112] : memref<64x256xf32, #tpu.memory_space<vmem>>, vector<8x256xf32>
    %cst_113 = arith.constant dense<0.000000e+00> : vector<8x256xf32>
    %239 = tpu.matmul %236, %235, %cst_113 {dimension_numbers = #tpu.dot_dimension_numbers<[1], [0], [0], [1], [0, 0, 1, 1], [], []>} : vector<8x64xf32>, vector<64x256xf32>, vector<8x256xf32> -> vector<8x256xf32>
    %240 = arith.addf %238, %239 : vector<8x256xf32>
    %241 = vector.extract_strided_slice %240 {offsets = [0, 0], sizes = [8, 192], strides = [1, 1]} : vector<8x256xf32> to vector<8x192xf32>
    %242 = arith.negf %241 : vector<8x192xf32>
    %243 = math.exp %242 : vector<8x192xf32>
    %cst_114 = arith.constant 1.000000e+00 : f32
    %244 = vector.broadcast %cst_114 : f32 to vector<8x192xf32>
    %245 = arith.addf %244, %243 : vector<8x192xf32>
    %246 = arith.divf %244, %245 : vector<8x192xf32>
    %247 = vector.extract_strided_slice %246 {offsets = [0, 0], sizes = [8, 64], strides = [1, 1]} : vector<8x192xf32> to vector<8x64xf32>
    %248 = vector.extract_strided_slice %246 {offsets = [0, 64], sizes = [8, 64], strides = [1, 1]} : vector<8x192xf32> to vector<8x64xf32>
    %249 = vector.extract_strided_slice %246 {offsets = [0, 128], sizes = [8, 64], strides = [1, 1]} : vector<8x192xf32> to vector<8x64xf32>
    %250 = vector.extract_strided_slice %240 {offsets = [0, 192], sizes = [8, 64], strides = [1, 1]} : vector<8x256xf32> to vector<8x64xf32>
    %251 = math.tanh %250 : vector<8x64xf32>
    %252 = arith.mulf %248, %237 : vector<8x64xf32>
    %253 = arith.mulf %247, %251 : vector<8x64xf32>
    %254 = arith.addf %252, %253 : vector<8x64xf32>
    %255 = math.tanh %254 : vector<8x64xf32>
    %256 = arith.mulf %249, %255 : vector<8x64xf32>
    %c8_115 = arith.constant 8 : index
    %c0_116 = arith.constant 0 : index
    %257 = vector.load %arg8[%c8_115, %c0_116] : memref<64x256xf32, #tpu.memory_space<vmem>>, vector<8x256xf32>
    %cst_117 = arith.constant dense<0.000000e+00> : vector<8x256xf32>
    %258 = tpu.matmul %256, %235, %cst_117 {dimension_numbers = #tpu.dot_dimension_numbers<[1], [0], [0], [1], [0, 0, 1, 1], [], []>} : vector<8x64xf32>, vector<64x256xf32>, vector<8x256xf32> -> vector<8x256xf32>
    %259 = arith.addf %257, %258 : vector<8x256xf32>
    %260 = vector.extract_strided_slice %259 {offsets = [0, 0], sizes = [8, 192], strides = [1, 1]} : vector<8x256xf32> to vector<8x192xf32>
    %261 = arith.negf %260 : vector<8x192xf32>
    %262 = math.exp %261 : vector<8x192xf32>
    %cst_118 = arith.constant 1.000000e+00 : f32
    %263 = vector.broadcast %cst_118 : f32 to vector<8x192xf32>
    %264 = arith.addf %263, %262 : vector<8x192xf32>
    %265 = arith.divf %263, %264 : vector<8x192xf32>
    %266 = vector.extract_strided_slice %265 {offsets = [0, 0], sizes = [8, 64], strides = [1, 1]} : vector<8x192xf32> to vector<8x64xf32>
    %267 = vector.extract_strided_slice %265 {offsets = [0, 64], sizes = [8, 64], strides = [1, 1]} : vector<8x192xf32> to vector<8x64xf32>
    %268 = vector.extract_strided_slice %265 {offsets = [0, 128], sizes = [8, 64], strides = [1, 1]} : vector<8x192xf32> to vector<8x64xf32>
    %269 = vector.extract_strided_slice %259 {offsets = [0, 192], sizes = [8, 64], strides = [1, 1]} : vector<8x256xf32> to vector<8x64xf32>
    %270 = math.tanh %269 : vector<8x64xf32>
    %271 = arith.mulf %267, %254 : vector<8x64xf32>
    %272 = arith.mulf %266, %270 : vector<8x64xf32>
    %273 = arith.addf %271, %272 : vector<8x64xf32>
    %274 = math.tanh %273 : vector<8x64xf32>
    %275 = arith.mulf %268, %274 : vector<8x64xf32>
    %c16_119 = arith.constant 16 : index
    %c0_120 = arith.constant 0 : index
    %276 = vector.load %arg8[%c16_119, %c0_120] : memref<64x256xf32, #tpu.memory_space<vmem>>, vector<8x256xf32>
    %cst_121 = arith.constant dense<0.000000e+00> : vector<8x256xf32>
    %277 = tpu.matmul %275, %235, %cst_121 {dimension_numbers = #tpu.dot_dimension_numbers<[1], [0], [0], [1], [0, 0, 1, 1], [], []>} : vector<8x64xf32>, vector<64x256xf32>, vector<8x256xf32> -> vector<8x256xf32>
    %278 = arith.addf %276, %277 : vector<8x256xf32>
    %279 = vector.extract_strided_slice %278 {offsets = [0, 0], sizes = [8, 192], strides = [1, 1]} : vector<8x256xf32> to vector<8x192xf32>
    %280 = arith.negf %279 : vector<8x192xf32>
    %281 = math.exp %280 : vector<8x192xf32>
    %cst_122 = arith.constant 1.000000e+00 : f32
    %282 = vector.broadcast %cst_122 : f32 to vector<8x192xf32>
    %283 = arith.addf %282, %281 : vector<8x192xf32>
    %284 = arith.divf %282, %283 : vector<8x192xf32>
    %285 = vector.extract_strided_slice %284 {offsets = [0, 0], sizes = [8, 64], strides = [1, 1]} : vector<8x192xf32> to vector<8x64xf32>
    %286 = vector.extract_strided_slice %284 {offsets = [0, 64], sizes = [8, 64], strides = [1, 1]} : vector<8x192xf32> to vector<8x64xf32>
    %287 = vector.extract_strided_slice %284 {offsets = [0, 128], sizes = [8, 64], strides = [1, 1]} : vector<8x192xf32> to vector<8x64xf32>
    %288 = vector.extract_strided_slice %278 {offsets = [0, 192], sizes = [8, 64], strides = [1, 1]} : vector<8x256xf32> to vector<8x64xf32>
    %289 = math.tanh %288 : vector<8x64xf32>
    %290 = arith.mulf %286, %273 : vector<8x64xf32>
    %291 = arith.mulf %285, %289 : vector<8x64xf32>
    %292 = arith.addf %290, %291 : vector<8x64xf32>
    %293 = math.tanh %292 : vector<8x64xf32>
    %294 = arith.mulf %287, %293 : vector<8x64xf32>
    %c24_123 = arith.constant 24 : index
    %c0_124 = arith.constant 0 : index
    %295 = vector.load %arg8[%c24_123, %c0_124] : memref<64x256xf32, #tpu.memory_space<vmem>>, vector<8x256xf32>
    %cst_125 = arith.constant dense<0.000000e+00> : vector<8x256xf32>
    %296 = tpu.matmul %294, %235, %cst_125 {dimension_numbers = #tpu.dot_dimension_numbers<[1], [0], [0], [1], [0, 0, 1, 1], [], []>} : vector<8x64xf32>, vector<64x256xf32>, vector<8x256xf32> -> vector<8x256xf32>
    %297 = arith.addf %295, %296 : vector<8x256xf32>
    %298 = vector.extract_strided_slice %297 {offsets = [0, 0], sizes = [8, 192], strides = [1, 1]} : vector<8x256xf32> to vector<8x192xf32>
    %299 = arith.negf %298 : vector<8x192xf32>
    %300 = math.exp %299 : vector<8x192xf32>
    %cst_126 = arith.constant 1.000000e+00 : f32
    %301 = vector.broadcast %cst_126 : f32 to vector<8x192xf32>
    %302 = arith.addf %301, %300 : vector<8x192xf32>
    %303 = arith.divf %301, %302 : vector<8x192xf32>
    %304 = vector.extract_strided_slice %303 {offsets = [0, 0], sizes = [8, 64], strides = [1, 1]} : vector<8x192xf32> to vector<8x64xf32>
    %305 = vector.extract_strided_slice %303 {offsets = [0, 64], sizes = [8, 64], strides = [1, 1]} : vector<8x192xf32> to vector<8x64xf32>
    %306 = vector.extract_strided_slice %303 {offsets = [0, 128], sizes = [8, 64], strides = [1, 1]} : vector<8x192xf32> to vector<8x64xf32>
    %307 = vector.extract_strided_slice %297 {offsets = [0, 192], sizes = [8, 64], strides = [1, 1]} : vector<8x256xf32> to vector<8x64xf32>
    %308 = math.tanh %307 : vector<8x64xf32>
    %309 = arith.mulf %305, %292 : vector<8x64xf32>
    %310 = arith.mulf %304, %308 : vector<8x64xf32>
    %311 = arith.addf %309, %310 : vector<8x64xf32>
    %312 = math.tanh %311 : vector<8x64xf32>
    %313 = arith.mulf %306, %312 : vector<8x64xf32>
    %c32_127 = arith.constant 32 : index
    %c0_128 = arith.constant 0 : index
    %314 = vector.load %arg8[%c32_127, %c0_128] : memref<64x256xf32, #tpu.memory_space<vmem>>, vector<8x256xf32>
    %cst_129 = arith.constant dense<0.000000e+00> : vector<8x256xf32>
    %315 = tpu.matmul %313, %235, %cst_129 {dimension_numbers = #tpu.dot_dimension_numbers<[1], [0], [0], [1], [0, 0, 1, 1], [], []>} : vector<8x64xf32>, vector<64x256xf32>, vector<8x256xf32> -> vector<8x256xf32>
    %316 = arith.addf %314, %315 : vector<8x256xf32>
    %317 = vector.extract_strided_slice %316 {offsets = [0, 0], sizes = [8, 192], strides = [1, 1]} : vector<8x256xf32> to vector<8x192xf32>
    %318 = arith.negf %317 : vector<8x192xf32>
    %319 = math.exp %318 : vector<8x192xf32>
    %cst_130 = arith.constant 1.000000e+00 : f32
    %320 = vector.broadcast %cst_130 : f32 to vector<8x192xf32>
    %321 = arith.addf %320, %319 : vector<8x192xf32>
    %322 = arith.divf %320, %321 : vector<8x192xf32>
    %323 = vector.extract_strided_slice %322 {offsets = [0, 0], sizes = [8, 64], strides = [1, 1]} : vector<8x192xf32> to vector<8x64xf32>
    %324 = vector.extract_strided_slice %322 {offsets = [0, 64], sizes = [8, 64], strides = [1, 1]} : vector<8x192xf32> to vector<8x64xf32>
    %325 = vector.extract_strided_slice %322 {offsets = [0, 128], sizes = [8, 64], strides = [1, 1]} : vector<8x192xf32> to vector<8x64xf32>
    %326 = vector.extract_strided_slice %316 {offsets = [0, 192], sizes = [8, 64], strides = [1, 1]} : vector<8x256xf32> to vector<8x64xf32>
    %327 = math.tanh %326 : vector<8x64xf32>
    %328 = arith.mulf %324, %311 : vector<8x64xf32>
    %329 = arith.mulf %323, %327 : vector<8x64xf32>
    %330 = arith.addf %328, %329 : vector<8x64xf32>
    %331 = math.tanh %330 : vector<8x64xf32>
    %332 = arith.mulf %325, %331 : vector<8x64xf32>
    %c40_131 = arith.constant 40 : index
    %c0_132 = arith.constant 0 : index
    %333 = vector.load %arg8[%c40_131, %c0_132] : memref<64x256xf32, #tpu.memory_space<vmem>>, vector<8x256xf32>
    %cst_133 = arith.constant dense<0.000000e+00> : vector<8x256xf32>
    %334 = tpu.matmul %332, %235, %cst_133 {dimension_numbers = #tpu.dot_dimension_numbers<[1], [0], [0], [1], [0, 0, 1, 1], [], []>} : vector<8x64xf32>, vector<64x256xf32>, vector<8x256xf32> -> vector<8x256xf32>
    %335 = arith.addf %333, %334 : vector<8x256xf32>
    %336 = vector.extract_strided_slice %335 {offsets = [0, 0], sizes = [8, 192], strides = [1, 1]} : vector<8x256xf32> to vector<8x192xf32>
    %337 = arith.negf %336 : vector<8x192xf32>
    %338 = math.exp %337 : vector<8x192xf32>
    %cst_134 = arith.constant 1.000000e+00 : f32
    %339 = vector.broadcast %cst_134 : f32 to vector<8x192xf32>
    %340 = arith.addf %339, %338 : vector<8x192xf32>
    %341 = arith.divf %339, %340 : vector<8x192xf32>
    %342 = vector.extract_strided_slice %341 {offsets = [0, 0], sizes = [8, 64], strides = [1, 1]} : vector<8x192xf32> to vector<8x64xf32>
    %343 = vector.extract_strided_slice %341 {offsets = [0, 64], sizes = [8, 64], strides = [1, 1]} : vector<8x192xf32> to vector<8x64xf32>
    %344 = vector.extract_strided_slice %341 {offsets = [0, 128], sizes = [8, 64], strides = [1, 1]} : vector<8x192xf32> to vector<8x64xf32>
    %345 = vector.extract_strided_slice %335 {offsets = [0, 192], sizes = [8, 64], strides = [1, 1]} : vector<8x256xf32> to vector<8x64xf32>
    %346 = math.tanh %345 : vector<8x64xf32>
    %347 = arith.mulf %343, %330 : vector<8x64xf32>
    %348 = arith.mulf %342, %346 : vector<8x64xf32>
    %349 = arith.addf %347, %348 : vector<8x64xf32>
    %350 = math.tanh %349 : vector<8x64xf32>
    %351 = arith.mulf %344, %350 : vector<8x64xf32>
    %c48_135 = arith.constant 48 : index
    %c0_136 = arith.constant 0 : index
    %352 = vector.load %arg8[%c48_135, %c0_136] : memref<64x256xf32, #tpu.memory_space<vmem>>, vector<8x256xf32>
    %cst_137 = arith.constant dense<0.000000e+00> : vector<8x256xf32>
    %353 = tpu.matmul %351, %235, %cst_137 {dimension_numbers = #tpu.dot_dimension_numbers<[1], [0], [0], [1], [0, 0, 1, 1], [], []>} : vector<8x64xf32>, vector<64x256xf32>, vector<8x256xf32> -> vector<8x256xf32>
    %354 = arith.addf %352, %353 : vector<8x256xf32>
    %355 = vector.extract_strided_slice %354 {offsets = [0, 0], sizes = [8, 192], strides = [1, 1]} : vector<8x256xf32> to vector<8x192xf32>
    %356 = arith.negf %355 : vector<8x192xf32>
    %357 = math.exp %356 : vector<8x192xf32>
    %cst_138 = arith.constant 1.000000e+00 : f32
    %358 = vector.broadcast %cst_138 : f32 to vector<8x192xf32>
    %359 = arith.addf %358, %357 : vector<8x192xf32>
    %360 = arith.divf %358, %359 : vector<8x192xf32>
    %361 = vector.extract_strided_slice %360 {offsets = [0, 0], sizes = [8, 64], strides = [1, 1]} : vector<8x192xf32> to vector<8x64xf32>
    %362 = vector.extract_strided_slice %360 {offsets = [0, 64], sizes = [8, 64], strides = [1, 1]} : vector<8x192xf32> to vector<8x64xf32>
    %363 = vector.extract_strided_slice %360 {offsets = [0, 128], sizes = [8, 64], strides = [1, 1]} : vector<8x192xf32> to vector<8x64xf32>
    %364 = vector.extract_strided_slice %354 {offsets = [0, 192], sizes = [8, 64], strides = [1, 1]} : vector<8x256xf32> to vector<8x64xf32>
    %365 = math.tanh %364 : vector<8x64xf32>
    %366 = arith.mulf %362, %349 : vector<8x64xf32>
    %367 = arith.mulf %361, %365 : vector<8x64xf32>
    %368 = arith.addf %366, %367 : vector<8x64xf32>
    %369 = math.tanh %368 : vector<8x64xf32>
    %370 = arith.mulf %363, %369 : vector<8x64xf32>
    %c56_139 = arith.constant 56 : index
    %c0_140 = arith.constant 0 : index
    %371 = vector.load %arg8[%c56_139, %c0_140] : memref<64x256xf32, #tpu.memory_space<vmem>>, vector<8x256xf32>
    %cst_141 = arith.constant dense<0.000000e+00> : vector<8x256xf32>
    %372 = tpu.matmul %370, %235, %cst_141 {dimension_numbers = #tpu.dot_dimension_numbers<[1], [0], [0], [1], [0, 0, 1, 1], [], []>} : vector<8x64xf32>, vector<64x256xf32>, vector<8x256xf32> -> vector<8x256xf32>
    %373 = arith.addf %371, %372 : vector<8x256xf32>
    %374 = vector.extract_strided_slice %373 {offsets = [0, 0], sizes = [8, 192], strides = [1, 1]} : vector<8x256xf32> to vector<8x192xf32>
    %375 = arith.negf %374 : vector<8x192xf32>
    %376 = math.exp %375 : vector<8x192xf32>
    %cst_142 = arith.constant 1.000000e+00 : f32
    %377 = vector.broadcast %cst_142 : f32 to vector<8x192xf32>
    %378 = arith.addf %377, %376 : vector<8x192xf32>
    %379 = arith.divf %377, %378 : vector<8x192xf32>
    %380 = vector.extract_strided_slice %379 {offsets = [0, 0], sizes = [8, 64], strides = [1, 1]} : vector<8x192xf32> to vector<8x64xf32>
    %381 = vector.extract_strided_slice %379 {offsets = [0, 64], sizes = [8, 64], strides = [1, 1]} : vector<8x192xf32> to vector<8x64xf32>
    %382 = vector.extract_strided_slice %379 {offsets = [0, 128], sizes = [8, 64], strides = [1, 1]} : vector<8x192xf32> to vector<8x64xf32>
    %383 = vector.extract_strided_slice %373 {offsets = [0, 192], sizes = [8, 64], strides = [1, 1]} : vector<8x256xf32> to vector<8x64xf32>
    %384 = math.tanh %383 : vector<8x64xf32>
    %385 = arith.mulf %381, %368 : vector<8x64xf32>
    %386 = arith.mulf %380, %384 : vector<8x64xf32>
    %387 = arith.addf %385, %386 : vector<8x64xf32>
    %388 = math.tanh %387 : vector<8x64xf32>
    %389 = arith.mulf %382, %388 : vector<8x64xf32>
    %390 = vector.extract_strided_slice %389 {offsets = [0, 0], sizes = [8, 32], strides = [1, 1]} : vector<8x64xf32> to vector<8x32xf32>
    %391 = vector.extract_strided_slice %389 {offsets = [0, 32], sizes = [8, 32], strides = [1, 1]} : vector<8x64xf32> to vector<8x32xf32>
    %392 = tpu.concatenate %226, %227, %390, %391 in 1 : vector<8x32xf32>, vector<8x32xf32>, vector<8x32xf32>, vector<8x32xf32> -> vector<8x128xf32>
    %c0_143 = arith.constant 0 : index
    %c0_144 = arith.constant 0 : index
    %393 = vector.load %arg7[%c0_143, %c0_144] : memref<8x128xf32, #tpu.memory_space<vmem>>, vector<8x128xf32>
    tpu.vector_store %arg7[%c0_143, %c0_144], %392 {strides = array<i32>} : memref<8x128xf32, #tpu.memory_space<vmem>>, vector<8x128xf32>,
    return
  }
}

</mosaic_0001>

<bundles_post_ra>
// kernel: tpu_custom_call.1
= control target key start
LH: loop header
LB: loop body
LE: loop exit
PB: predicated region body
PF: predicated region fallthrough
CT: control target
= control target key end

     0   :  { %12 = vsyncpa [#allocation5], 0  ;;  %s3411_s0 = inlined_call_operand.hbm [shape: f32[64,64], index: 0, kind: input, shape index: {}]   ;;  %s3412_s1 = inlined_call_operand.hbm [shape: f32[64,256], index: 1, kind: input, shape index: {}]   ;;  %s3413_s2 = inlined_call_operand.hbm [shape: f32[64,256], index: 2, kind: input, shape index: {}]   ;;  %s3414_s3 = inlined_call_operand.vmem [shape: f32[1,256], index: 3, kind: input, shape index: {}]   ;;  %s3415_s4 = inlined_call_operand.hbm [shape: f32[128,256], index: 4, kind: input, shape index: {}]   ;;  %s3416_s5 = inlined_call_operand.hbm [shape: f32[64,256], index: 5, kind: input, shape index: {}]   ;;  %s3417_s6 = inlined_call_operand.vmem [shape: f32[1,256], index: 6, kind: input, shape index: {}]   ;;  %s3418_s7 = inlined_call_operand.hbm [shape: f32[8,128], index: 7, kind: output, shape index: {}]  }
   0x1   :  { %13 = vsyncpa [#allocation8], 0 }
   0x2   :  { %14 = vsyncpa [#allocation11], 0 }
   0x3   :  { %15 = vsyncpa [#allocation6], 0  ;;  %s2695_s24 = smov [#allocation7]  }
   0x4   :  { %s33_s25 = sshll.u32 %s2695_s24, 4  ;;  %s34_s25 = int_to_ptr.vmem [resolvable:$true] %s33_s25 }
   0x5   :  { %s2575_s26 = scalar_lea.vmem %s34_s25, 2048  ;;  %p2580_p1 = scmp.lt.s32.totalorder %s34_s25, %s34_s25 }
   0x6   :  { %p2576_p0 = scmp.ne.s32.totalorder %s34_s25, %s2575_s26  ;;  %p2581_p2 = scmp.lt.s32.totalorder %s2575_s26, %s2575_s26 }
   0x8   :  { %p2582_p3 = por %p2581_p2, %p2580_p1 }
   0xa   :  { %p2583_p4 = pnand %p2582_p3, %p2576_p0 }
   0xc   :  { %2586 = shalt.err (!%p2583_p4)
}
   0xd   :  { %s2696_s27 = smov 256   ;;  %s2697_s28 = smov 16  }
   0xe   :  { %39 = dma.hbm_to_vmem [thread:$0]  %s3412_s1, 2048, %s34_s25, [#allocation8], %s2696_s27, %s2696_s27, %s2697_s28  }
   0xf   :  { %s2698_s8 = smov [#allocation10]   ;;  %s2699_s10 = smov [#allocation4]  }
  0x10   :  { %s59_s9 = sshll.u32 %s2698_s8, 4  ;;  %s21_s11 = sshll.u32 %s2699_s10, 4  ;;  %s60_s9 = int_to_ptr.vmem [resolvable:$true] %s59_s9  ;;  %s22_s11 = int_to_ptr.vmem [resolvable:$true] %s21_s11 }
  0x11   :  { %s2595_s12 = scalar_lea.vmem %s60_s9, 4096  ;;  %p2600_p6 = scmp.lt.s32.totalorder %s60_s9, %s60_s9 }
  0x12   :  { %p2596_p5 = scmp.ne.s32.totalorder %s60_s9, %s2595_s12  ;;  %p2601_p7 = scmp.lt.s32.totalorder %s2595_s12, %s2595_s12 }
  0x14   :  { %p2602_p8 = por %p2601_p7, %p2600_p6 }
  0x16   :  { %p2603_p9 = pnand %p2602_p8, %p2596_p5 }
  0x18   :  { %2606 = shalt.err (!%p2603_p9)
}
  0x19   :  { %65 = dma.hbm_to_vmem [thread:$0]  %s3415_s4, 4096, %s60_s9, [#allocation11], %s2696_s27, %s2696_s27, %s2697_s28  }
  0x1a   :  { %s2615_s1 = scalar_lea.vmem %s22_s11, 1024  ;;  %p2620_p11 = scmp.lt.s32.totalorder %s22_s11, %s22_s11 }
  0x1b   :  { %p2616_p10 = scmp.ne.s32.totalorder %s22_s11, %s2615_s1  ;;  %p2621_p12 = scmp.lt.s32.totalorder %s2615_s1, %s2615_s1 }
  0x1d   :  { %p2622_p13 = por %p2621_p12, %p2620_p11 }
  0x1f   :  { %p2623_p0 = pnand %p2622_p13, %p2616_p10 }
  0x21   :  { %2626 = shalt.err (!%p2623_p0)
}
  0x22   :  { %s2700_s15 = smov 128   ;;  %s2701_s16 = smov 8  }
  0x23   :  { %27 = dma.hbm_to_vmem [thread:$0]  %s3411_s0, 1024, %s22_s11, [#allocation5], %s2700_s15, %s2700_s15, %s2701_s16  }
  0x24   :  { %s2702_s19 = smov [#allocation9]   ;;  %s2703_s21 = smov [#allocation12]  }
  0x25   :  { %s45_s20 = sshll.u32 %s2702_s19, 4  ;;  %s71_s22 = sshll.u32 %s2703_s21, 4  ;;  %s46_s20 = int_to_ptr.vmem [resolvable:$true] %s45_s20  ;;  %s72_s22 = int_to_ptr.vmem [resolvable:$true] %s71_s22 }
  0x26   :  { %s2635_s4 = scalar_lea.vmem %s46_s20, 2048  ;;  %p2640_p2 = scmp.lt.s32.totalorder %s46_s20, %s46_s20 }
  0x27   :  { %p2636_p1 = scmp.ne.s32.totalorder %s46_s20, %s2635_s4  ;;  %p2641_p3 = scmp.lt.s32.totalorder %s2635_s4, %s2635_s4 }
  0x29   :  { %p2642_p4 = por %p2641_p3, %p2640_p2 }
  0x2b   :  { %p2643_p5 = pnand %p2642_p4, %p2636_p1 }
  0x2d   :  { %2646 = shalt.err (!%p2643_p5)
}
  0x2e   :  { %51 = dma.hbm_to_vmem [thread:$0]  %s3413_s2, 2048, %s46_s20, [#allocation8], %s2696_s27, %s2696_s27, %s2697_s28  }
  0x2f   :  { %s2655_s0 = scalar_lea.vmem %s72_s22, 2048  ;;  %p2660_p7 = scmp.lt.s32.totalorder %s72_s22, %s72_s22 }
  0x30   :  { %p2656_p6 = scmp.ne.s32.totalorder %s72_s22, %s2655_s0  ;;  %p2661_p8 = scmp.lt.s32.totalorder %s2655_s0, %s2655_s0 }
  0x32   :  { %p2662_p9 = por %p2661_p8, %p2660_p7 }
  0x34   :  { %p2663_p10 = pnand %p2662_p9, %p2656_p6 }
  0x36   :  { %2666 = shalt.err (!%p2663_p10)
}
  0x37   :  { %77 = dma.hbm_to_vmem [thread:$0]  %s3416_s5, 2048, %s72_s22, [#allocation11], %s2696_s27, %s2696_s27, %s2697_s28  }
  0x38   :  { %2687 = dma.done.wait [#allocation5], 1024  }
  0x39   :  { %2688 = vsyncadd [#allocation5], 4294966272 }
  0x3a   :  { %2689 = dma.done.wait [#allocation8], 4096  }
  0x3b   :  { %2690 = vsyncadd [#allocation8], 4294963200 }
  0x3c   :  { %2691 = dma.done.wait [#allocation11], 6144  }
  0x3d   :  { %2692 = vsyncadd [#allocation11], 4294961152  ;;  %v2704_v0 = vmov 0.0   ;;  %v118_v1 = vld [vmem:[#allocation7 + $0x78] sm:$0xff]  ;;  %v117_v3 = vld [vmem:[#allocation7 + $0x70] sm:$0xff]  ;;  %vm131_vm0 = vcmask 523264   ;;  %v121_v34 = vlaneseq }
  0x3e   :  { %220 = vmatprep.mubr.f32.mxu0 %v2704_v0  ;;  %370 = vmatprep.mubr.f32.mxu1 %v2704_v0  ;;  %v2776_v2 = vld [vmem:[#allocation9 + $0x78] sm:$0xff]  ;;  %v2779_v4 = vld [vmem:[#allocation9 + $0x70] sm:$0xff]  ;;  %v116_v5 = vld [vmem:[#allocation7 + $0x68] sm:$0xff]  ;;  %vm409_vm1 = vcmask 261120   ;;  %vm415_vm2 = vcmask 785920   ;;  %vm419_vm3 = vcmask 1048320  }
  0x3f   :  { %172 = vmatprep.subr.mxu0 %v118_v1  ;;  %322 = vmatprep.subr.mxu1 %v2776_v2  ;;  %v2781_v6 = vld [vmem:[#allocation9 + $0x68] sm:$0xff]  ;;  %v115_v7 = vld [vmem:[#allocation7 + $0x60] sm:$0xff]  ;;  %v114_v9 = vld [vmem:[#allocation7 + $0x58] sm:$0xff]  ;;  %v2862_v35 = vshrl.u32 %v121_v34, 7  ;;  %vm417_vm4 = vcmask 523520   ;;  %vm2289_vm5 = vcmask 785408  }
  0x40   :  { %173 = vmatpush1.msra.mxu0 %v117_v3  ;;  %323 = vmatpush1.msra.mxu1 %v2779_v4  ;;  %v2784_v8 = vld [vmem:[#allocation9 + $0x60] sm:$0xff]  ;;  %v2787_v10 = vld [vmem:[#allocation9 + $0x58] sm:$0xff]  ;;  %v113_v11 = vld [vmem:[#allocation7 + $0x50] sm:$0xff] }
  0x41   :  { %174 = vmatprep.subr.mxu0 %v116_v5  ;;  %324 = vmatprep.subr.mxu1 %v2781_v6  ;;  %v2789_v12 = vld [vmem:[#allocation9 + $0x50] sm:$0xff]  ;;  %v112_v13 = vld [vmem:[#allocation7 + $0x48] sm:$0xff]  ;;  %v111_v15 = vld [vmem:[#allocation7 + $0x40] sm:$0xff]  ;;  %v123_v36 = vsub.s32 0, %v2862_v35  ;;  %v127_v38 = vsub.s32 1, %v2862_v35 }
  0x42   :  { %175 = vmatpush1.msra.mxu0 %v115_v7  ;;  %325 = vmatpush1.msra.mxu1 %v2784_v8  ;;  %v2792_v14 = vld [vmem:[#allocation9 + $0x48] sm:$0xff]  ;;  %v2795_v16 = vld [vmem:[#allocation9 + $0x40] sm:$0xff]  ;;  %v110_v17 = vld [vmem:[#allocation7 + $0x38] sm:$0xff] }
  0x43   :  { %176 = vmatprep.subr.mxu0 %v114_v9  ;;  %326 = vmatprep.subr.mxu1 %v2787_v10  ;;  %v2798_v18 = vld [vmem:[#allocation9 + $0x38] sm:$0xff]  ;;  %v109_v19 = vld [vmem:[#allocation7 + $0x30] sm:$0xff]  ;;  %v108_v21 = vld [vmem:[#allocation7 + $0x28] sm:$0xff] }
  0x44   :  { %177 = vmatpush1.msra.mxu0 %v113_v11  ;;  %327 = vmatpush1.msra.mxu1 %v2789_v12  ;;  %v2801_v20 = vld [vmem:[#allocation9 + $0x30] sm:$0xff]  ;;  %v2804_v22 = vld [vmem:[#allocation9 + $0x28] sm:$0xff]  ;;  %v107_v23 = vld [vmem:[#allocation7 + $0x20] sm:$0xff] }
  0x45   :  { %178 = vmatprep.subr.mxu0 %v112_v13  ;;  %328 = vmatprep.subr.mxu1 %v2792_v14  ;;  %v2807_v24 = vld [vmem:[#allocation9 + $0x20] sm:$0xff]  ;;  %v106_v25 = vld [vmem:[#allocation7 + $0x18] sm:$0xff]  ;;  %v105_v27 = vld [vmem:[#allocation7 + $0x10] sm:$0xff] }
  0x46   :  { %179 = vmatpush1.msra.mxu0 %v111_v15  ;;  %329 = vmatpush1.msra.mxu1 %v2795_v16  ;;  %v2810_v26 = vld [vmem:[#allocation9 + $0x18] sm:$0xff]  ;;  %v2813_v28 = vld [vmem:[#allocation9 + $0x10] sm:$0xff]  ;;  %v104_v29 = vld [vmem:[#allocation7 + $0x8] sm:$0xff] }
  0x47   :  { %180 = vmatprep.subr.mxu0 %v110_v17  ;;  %330 = vmatprep.subr.mxu1 %v2798_v18  ;;  %v2816_v30 = vld [vmem:[#allocation9 + $0x8] sm:$0xff]  ;;  %v103_v31 = vld [vmem:[#allocation7] sm:$0xff] }
  0x48   :  { %181 = vmatpush1.msra.mxu0 %v109_v19  ;;  %331 = vmatpush1.msra.mxu1 %v2801_v20  ;;  %v2819_v32 = vld [vmem:[#allocation9] sm:$0xff]  ;;  %v96_v56 = vld [vmem:[#allocation4 + $0x8] sm:$0xff] }
  0x49   :  { %182 = vmatprep.subr.mxu0 %v108_v21  ;;  %332 = vmatprep.subr.mxu1 %v2804_v22  ;;  %v95_v33 = vld [vmem:[#allocation4] sm:$0xff] }
  0x4a   :  { %183 = vmatpush1.msra.mxu0 %v107_v23  ;;  %333 = vmatpush1.msra.mxu1 %v2807_v24  ;;  %v119_v37 = vld [vmem:[%s3414_s3] sm:$0x3]  ;;  %s2705_s3 = smov 64  }
  0x4b   :  { %184 = vmatprep.subr.mxu0 %v106_v25  ;;  %334 = vmatprep.subr.mxu1 %v2810_v26  ;;  %v2871_v39 = vrot.slane %v119_v37, %v123_v36  ;;  %v2875_v40 = vrot.slane %v119_v37, %v127_v38  ;;  %v97_v37 = vld [vmem:[#allocation4 + $0x10] sm:$0xff] }
  0x4c   :  { %185 = vmatpush1.msra.mxu0 %v105_v27  ;;  %335 = vmatpush1.msra.mxu1 %v2813_v28 }
  0x4d   :  { %186 = vmatprep.subr.mxu0 %v104_v29  ;;  %336 = vmatprep.subr.mxu1 %v2816_v30 }
  0x4e   :  { %187 = vmatpush1.msra.mxu0 %v103_v31  ;;  %337 = vmatpush1.msra.mxu1 %v2819_v32 }
  0x4f   :  { %2309 = vmatmul.mubr.msk.f32.vlgmr.msra.gmra.mxu0 %vm131_vm0, %v95_v33  ;;  %371 = vmatmul.mubr.f32.vlgmr.msra.gmra.mxu1 %v2704_v0 }
  0x50   :  { %441 = vmatprep.subr.mxu1 %v2776_v2  ;;  %226 = vmatprep.mubr.f32.mxu0 %v2704_v0 }
  0x51   :  { %442 = vmatpush1.msra.mxu1 %v2779_v4  ;;  %489 = vmatprep.mubr.f32.mxu1 %v2704_v0 }
  0x52   :  { %443 = vmatprep.subr.mxu1 %v2781_v6  ;;  %556 = vmatprep.subr.mxu0 %v2776_v2 }
  0x53   :  { %444 = vmatpush1.msra.mxu1 %v2784_v8  ;;  %557 = vmatpush1.msra.mxu0 %v2779_v4 }
  0x54   :  { %445 = vmatprep.subr.mxu1 %v2787_v10  ;;  %558 = vmatprep.subr.mxu0 %v2781_v6 }
  0x55   :  { %446 = vmatpush1.msra.mxu1 %v2789_v12  ;;  %559 = vmatpush1.msra.mxu0 %v2784_v8 }
  0x56   :  { %447 = vmatprep.subr.mxu1 %v2792_v14  ;;  %560 = vmatprep.subr.mxu0 %v2787_v10 }
  0x57   :  { %448 = vmatpush1.msra.mxu1 %v2795_v16  ;;  %561 = vmatpush1.msra.mxu0 %v2789_v12 }
  0x58   :  { %449 = vmatprep.subr.mxu1 %v2798_v18  ;;  %562 = vmatprep.subr.mxu0 %v2792_v14 }
  0x59   :  { %450 = vmatpush1.msra.mxu1 %v2801_v20  ;;  %563 = vmatpush1.msra.mxu0 %v2795_v16 }
  0x5a   :  { %451 = vmatprep.subr.mxu1 %v2804_v22  ;;  %564 = vmatprep.subr.mxu0 %v2798_v18 }
  0x5b   :  { %452 = vmatpush1.msra.mxu1 %v2807_v24  ;;  %565 = vmatpush1.msra.mxu0 %v2801_v20 }
  0x5c   :  { %453 = vmatprep.subr.mxu1 %v2810_v26  ;;  %566 = vmatprep.subr.mxu0 %v2804_v22 }
  0x5d   :  { %454 = vmatpush1.msra.mxu1 %v2813_v28  ;;  %567 = vmatpush1.msra.mxu0 %v2807_v24 }
  0x5e   :  { %455 = vmatprep.subr.mxu1 %v2816_v30  ;;  %568 = vmatprep.subr.mxu0 %v2810_v26 }
  0x5f   :  { %456 = vmatpush1.msra.mxu1 %v2819_v32  ;;  %569 = vmatpush1.msra.mxu0 %v2813_v28 }
  0x60   :  { %570 = vmatprep.subr.mxu0 %v2816_v30  ;;  %671 = vmatprep.subr.mxu1 %v2776_v2 }
  0x61   :  { %571 = vmatpush1.msra.mxu0 %v2819_v32 }
  0x62   :  { %786 = vmatprep.subr.mxu0 %v2776_v2  ;;  %2310 = vmatmul.mubr.msk.f32.gmra.mxu0 %vm131_vm0, %v96_v56 }
  0x63   :  { %232 = vmatprep.mubr.f32.mxu0 %v2704_v0 }
  0x66   :  { %2311 = vmatmul.mubr.msk.f32.gmra.mxu0 %vm131_vm0, %v97_v37 }
  0x67   :  { %238 = vmatprep.mubr.f32.mxu0 %v2704_v0 }
 0x10f   :  { %v222_v41 = vpop.f32.mrf.mxu0  ;;  %v372_v42 = vpop.f32.mrf.mxu1 }
 0x110   :  { %v223_v43 = vadd.f32 %v222_v41, %v2871_v39  ;;  %v98_v41 = vld [vmem:[#allocation4 + $0x18] sm:$0xff] }
 0x111   :  { %v224_v44 = vpop.f32.mrf.mxu0  ;;  %v374_v47 = vpop.f32.mrf.mxu1  ;;  %2312 = vmatmul.mubr.msk.f32.gmra.mxu0 %vm131_vm0, %v98_v41 }
 0x112   :  { %v377_v45 = vadd.f32 %v372_v42, %v223_v43  ;;  %v225_v46 = vadd.f32 %v224_v44, %v2875_v40  ;;  %244 = vmatprep.mubr.f32.mxu0 %v2704_v0  ;;  %v99_v42 = vld [vmem:[#allocation4 + $0x20] sm:$0xff]  ;;  %v100_v43 = vld [vmem:[#allocation4 + $0x28] sm:$0xff]  ;;  %v101_v44 = vld [vmem:[#allocation4 + $0x30] sm:$0xff] }
 0x114   :  { %v378_v48 = vadd.f32 %v374_v47, %v225_v46  ;;  %v2317_v50 = vmul.f32 -1.442695, %v377_v45  ;;  %v102_v45 = vld [vmem:[#allocation4 + $0x38] sm:$0xff] }
 0x115   :  { %2313 = vmatmul.mubr.msk.f32.gmra.mxu0 %vm131_vm0, %v99_v42 }
 0x116   :  { %2375 = vtanh.f32 %v378_v48  ;;  %v2318_v61 = vmul.f32 -1.442695, %v378_v48  ;;  %250 = vmatprep.mubr.f32.mxu0 %v2704_v0 }
 0x117   :  { %2377 = vpow2.f32 %v2317_v50 }
 0x119   :  { %2314 = vmatmul.mubr.msk.f32.gmra.mxu0 %vm131_vm0, %v100_v43 }
 0x11a   :  { %256 = vmatprep.mubr.f32.mxu0 %v2704_v0 }
 0x11d   :  { %2315 = vmatmul.mubr.msk.f32.gmra.mxu0 %vm131_vm0, %v101_v44 }
 0x11e   :  { %262 = vmatprep.mubr.f32.mxu0 %v2704_v0 }
 0x121   :  { %2316 = vmatmul.mubr.msk.f32.gmra.mxu0 %vm131_vm0, %v102_v45 }
 0x122   :  { %v228_v7 = vpop.f32.mrf.mxu0  ;;  %604 = vmatprep.mubr.f32.mxu0 %v2704_v0 }
 0x123   :  { %v2376_v49 = vpop.eup %2375  ;;  %v229_v9 = vadd.f32 %v228_v7, %v2871_v39 }
 0x124   :  { %394 = vrot.lane.b32.xlu0 %v2376_v49, %s2705_s3  ;;  %v2378_v51 = vpop.eup %2377  ;;  %v230_v11 = vpop.f32.mrf.mxu0 }
 0x125   :  { %v385_v52 = vadd.f32 1.0, %v2378_v51  ;;  %v231_v15 = vadd.f32 %v230_v11, %v2875_v40 }
 0x126   :  { %v234_v56 = vpop.f32.mrf.mxu0 }
 0x127   :  { %2379 = vrcp.f32 %v385_v52  ;;  %v235_v11 = vadd.f32 %v234_v56, %v2871_v39 }
 0x134   :  { %v2380_v53 = vpop.eup %2379 }
 0x135   :  { %v392_v57 = vmul.f32 0.0, %v2380_v53 }
 0x196   :  { %v395_v54 = vpop.permute.xlu0 %394 }
 0x197   :  { %v397_v55 = vmul.f32 %v2380_v53, %v395_v54 }
 0x199   :  { %399 = vrot.lane.b32.xlu0 %v397_v55, %s2705_s3 }
 0x20b   :  { %v400_v58 = vpop.permute.xlu0 %399 }
 0x20c   :  { %v2883_v59 = vadd.f32 %v400_v58, %v392_v57  ;;  %v236_v57 = vpop.f32.mrf.mxu0 }
 0x20e   :  { %2381 = vtanh.f32 %v2883_v59  ;;  %v240_v58 = vpop.f32.mrf.mxu0 }
 0x20f   :  { %2383 = vpow2.f32 %v2318_v61 }
 0x21b   :  { %v2382_v60 = vpop.eup %2381 }
 0x21c   :  { %405 = vrot.lane.b32.xlu1 %v2382_v60, %s2705_s3  ;;  %v2384_v62 = vpop.eup %2383 }
 0x21d   :  { %v386_v63 = vadd.f32 1.0, %v2384_v62 }
 0x21f   :  { %2385 = vrcp.f32 %v386_v63 }
 0x22c   :  { %v2386_v1 = vpop.eup %2385 }
 0x28e   :  { %v406_v3 = vpop.permute.xlu1 %405 }
 0x28f   :  { %v2887_v5 = vmul.f32 %v2386_v1, %v406_v3 }
 0x291   :  { %2319 = vmatmul.mubr.msk.f32.vlgmr.msra.gmra.mxu1 %vm131_vm0, %v2887_v5  ;;  %410 = vst.msk [vmem:[#allocation3] sm:$0xff] %vm409_vm1, %v2887_v5 }
 0x292   :  { %672 = vmatpush1.msra.mxu1 %v2779_v4  ;;  %719 = vmatprep.mubr.f32.mxu1 %v2704_v0 }
 0x293   :  { %673 = vmatprep.subr.mxu1 %v2781_v6 }
 0x294   :  { %674 = vmatpush1.msra.mxu1 %v2784_v8 }
 0x295   :  { %675 = vmatprep.subr.mxu1 %v2787_v10 }
 0x296   :  { %676 = vmatpush1.msra.mxu1 %v2789_v12 }
 0x297   :  { %677 = vmatprep.subr.mxu1 %v2792_v14 }
 0x298   :  { %678 = vmatpush1.msra.mxu1 %v2795_v16 }
 0x299   :  { %679 = vmatprep.subr.mxu1 %v2798_v18 }
 0x29a   :  { %680 = vmatpush1.msra.mxu1 %v2801_v20 }
 0x29b   :  { %681 = vmatprep.subr.mxu1 %v2804_v22 }
 0x29c   :  { %682 = vmatpush1.msra.mxu1 %v2807_v24 }
 0x29d   :  { %683 = vmatprep.subr.mxu1 %v2810_v26 }
 0x29e   :  { %684 = vmatpush1.msra.mxu1 %v2813_v28 }
 0x29f   :  { %685 = vmatprep.subr.mxu1 %v2816_v30 }
 0x2a0   :  { %686 = vmatpush1.msra.mxu1 %v2819_v32 }
 0x2a1   :  { %901 = vmatprep.subr.mxu1 %v2776_v2 }
 0x351   :  { %v491_v13 = vpop.f32.mrf.mxu1 }
 0x352   :  { %v496_v17 = vadd.f32 %v491_v13, %v229_v9 }
 0x353   :  { %v493_v19 = vpop.f32.mrf.mxu1 }
 0x354   :  { %v497_v21 = vadd.f32 %v493_v19, %v231_v15  ;;  %v2320_v25 = vmul.f32 -1.442695, %v496_v17  ;;  %v237_v15 = vadd.f32 %v236_v57, %v2875_v40 }
 0x356   :  { %2387 = vtanh.f32 %v497_v21  ;;  %v2321_v50 = vmul.f32 -1.442695, %v497_v21 }
 0x357   :  { %2389 = vpow2.f32 %v2320_v25 }
 0x363   :  { %v2388_v23 = vpop.eup %2387 }
 0x364   :  { %513 = vrot.lane.b32.xlu1 %v2388_v23, %s2705_s3  ;;  %v2390_v27 = vpop.eup %2389 }
 0x365   :  { %v504_v29 = vadd.f32 1.0, %v2390_v27 }
 0x367   :  { %2391 = vrcp.f32 %v504_v29 }
 0x374   :  { %v2392_v31 = vpop.eup %2391 }
 0x375   :  { %v511_v46 = vmul.f32 %v2392_v31, %v2883_v59  ;;  %v242_v59 = vpop.f32.mrf.mxu0 }
 0x377   :  { %v2951_v60 = vpop.f32.mrf.mxu0 }
 0x379   :  { %v2953_v61 = vpop.f32.mrf.mxu0 }
 0x37b   :  { %v2955_v62 = vpop.f32.mrf.mxu0 }
 0x37d   :  { %v2957_v63 = vpop.f32.mrf.mxu0 }
 0x37f   :  { %v2959_v1 = vpop.f32.mrf.mxu0 }
 0x381   :  { %v2961_v3 = vpop.f32.mrf.mxu0 }
 0x383   :  { %v2963_v7 = vpop.f32.mrf.mxu0 }
 0x385   :  { %v2965_v9 = vpop.f32.mrf.mxu0 }
 0x3d6   :  { %v514_v33 = vpop.permute.xlu1 %513 }
 0x3d7   :  { %v516_v34 = vmul.f32 %v2392_v31, %v514_v33 }
 0x3d9   :  { %518 = vrot.lane.b32.xlu0 %v516_v34, %s2705_s3 }
 0x44b   :  { %v519_v47 = vpop.permute.xlu0 %518 }
 0x44c   :  { %v521_v48 = vadd.f32 %v519_v47, %v511_v46 }
 0x44e   :  { %2393 = vtanh.f32 %v521_v48 }
 0x44f   :  { %2395 = vpow2.f32 %v2321_v50 }
 0x45b   :  { %v2394_v49 = vpop.eup %2393 }
 0x45c   :  { %524 = vrot.lane.b32.xlu1 %v2394_v49, %s2705_s3  ;;  %v2396_v51 = vpop.eup %2395 }
 0x45d   :  { %v505_v52 = vadd.f32 1.0, %v2396_v51 }
 0x45f   :  { %2397 = vrcp.f32 %v505_v52  ;;  %v243_v52 = vadd.f32 %v242_v59, %v2875_v40 }
 0x46c   :  { %v2398_v53 = vpop.eup %2397 }
 0x4ce   :  { %v525_v54 = vpop.permute.xlu1 %524 }
 0x4cf   :  { %v2928_v55 = vmul.f32 %v2398_v53, %v525_v54 }
 0x4d1   :  { %2322 = vmatmul.mubr.msk.f32.vlgmr.msra.gmra.mxu0 %vm131_vm0, %v2928_v55  ;;  %528 = vst.msk [vmem:[#allocation3 + $0x8] sm:$0xff] %vm409_vm1, %v2928_v55 }
 0x4d2   :  { %787 = vmatpush1.msra.mxu0 %v2779_v4  ;;  %834 = vmatprep.mubr.f32.mxu0 %v2704_v0 }
 0x4d3   :  { %788 = vmatprep.subr.mxu0 %v2781_v6 }
 0x4d4   :  { %789 = vmatpush1.msra.mxu0 %v2784_v8 }
 0x4d5   :  { %790 = vmatprep.subr.mxu0 %v2787_v10 }
 0x4d6   :  { %791 = vmatpush1.msra.mxu0 %v2789_v12 }
 0x4d7   :  { %792 = vmatprep.subr.mxu0 %v2792_v14 }
 0x4d8   :  { %793 = vmatpush1.msra.mxu0 %v2795_v16 }
 0x4d9   :  { %794 = vmatprep.subr.mxu0 %v2798_v18 }
 0x4da   :  { %795 = vmatpush1.msra.mxu0 %v2801_v20 }
 0x4db   :  { %796 = vmatprep.subr.mxu0 %v2804_v22 }
 0x4dc   :  { %797 = vmatpush1.msra.mxu0 %v2807_v24 }
 0x4dd   :  { %798 = vmatprep.subr.mxu0 %v2810_v26 }
 0x4de   :  { %799 = vmatpush1.msra.mxu0 %v2813_v28 }
 0x4df   :  { %800 = vmatprep.subr.mxu0 %v2816_v30 }
 0x4e0   :  { %801 = vmatpush1.msra.mxu0 %v2819_v32 }
 0x4e1   :  { %1016 = vmatprep.subr.mxu0 %v2776_v2 }
 0x591   :  { %v606_v13 = vpop.f32.mrf.mxu0 }
 0x592   :  { %v611_v17 = vadd.f32 %v606_v13, %v235_v11 }
 0x593   :  { %v608_v19 = vpop.f32.mrf.mxu0 }
 0x594   :  { %v612_v21 = vadd.f32 %v608_v19, %v237_v15  ;;  %v2323_v25 = vmul.f32 -1.442695, %v611_v17 }
 0x596   :  { %2399 = vtanh.f32 %v612_v21  ;;  %v2324_v44 = vmul.f32 -1.442695, %v612_v21 }
 0x597   :  { %2401 = vpow2.f32 %v2323_v25 }
 0x5a3   :  { %v2400_v23 = vpop.eup %2399 }
 0x5a4   :  { %628 = vrot.lane.b32.xlu0 %v2400_v23, %s2705_s3  ;;  %v2402_v27 = vpop.eup %2401 }
 0x5a5   :  { %v619_v29 = vadd.f32 1.0, %v2402_v27 }
 0x5a7   :  { %2403 = vrcp.f32 %v619_v29 }
 0x5b4   :  { %v2404_v31 = vpop.eup %2403 }
 0x5b5   :  { %v626_v37 = vmul.f32 %v2404_v31, %v521_v48  ;;  %v241_v48 = vadd.f32 %v240_v58, %v2871_v39 }
 0x616   :  { %v629_v33 = vpop.permute.xlu0 %628 }
 0x617   :  { %v631_v34 = vmul.f32 %v2404_v31, %v629_v33 }
 0x619   :  { %633 = vrot.lane.b32.xlu1 %v631_v34, %s2705_s3 }
 0x68b   :  { %v634_v41 = vpop.permute.xlu1 %633 }
 0x68c   :  { %v636_v42 = vadd.f32 %v634_v41, %v626_v37  ;;  %v247_v37 = vadd.f32 %v2951_v60, %v2871_v39 }
 0x68e   :  { %2405 = vtanh.f32 %v636_v42 }
 0x68f   :  { %2407 = vpow2.f32 %v2324_v44 }
 0x69b   :  { %v2406_v43 = vpop.eup %2405 }
 0x69c   :  { %639 = vrot.lane.b32.xlu0 %v2406_v43, %s2705_s3  ;;  %v2408_v45 = vpop.eup %2407 }
 0x69d   :  { %v620_v46 = vadd.f32 1.0, %v2408_v45 }
 0x69f   :  { %2409 = vrcp.f32 %v620_v46 }
 0x6ac   :  { %v2410_v47 = vpop.eup %2409 }
 0x70e   :  { %v640_v49 = vpop.permute.xlu0 %639 }
 0x70f   :  { %v2972_v50 = vmul.f32 %v2410_v47, %v640_v49 }
 0x711   :  { %2325 = vmatmul.mubr.msk.f32.vlgmr.msra.gmra.mxu1 %vm131_vm0, %v2972_v50  ;;  %643 = vst.msk [vmem:[#allocation3 + $0x10] sm:$0xff] %vm409_vm1, %v2972_v50 }
 0x712   :  { %902 = vmatpush1.msra.mxu1 %v2779_v4  ;;  %949 = vmatprep.mubr.f32.mxu1 %v2704_v0 }
 0x713   :  { %903 = vmatprep.subr.mxu1 %v2781_v6 }
 0x714   :  { %904 = vmatpush1.msra.mxu1 %v2784_v8 }
 0x715   :  { %905 = vmatprep.subr.mxu1 %v2787_v10 }
 0x716   :  { %906 = vmatpush1.msra.mxu1 %v2789_v12 }
 0x717   :  { %907 = vmatprep.subr.mxu1 %v2792_v14 }
 0x718   :  { %908 = vmatpush1.msra.mxu1 %v2795_v16 }
 0x719   :  { %909 = vmatprep.subr.mxu1 %v2798_v18 }
 0x71a   :  { %910 = vmatpush1.msra.mxu1 %v2801_v20 }
 0x71b   :  { %911 = vmatprep.subr.mxu1 %v2804_v22 }
 0x71c   :  { %912 = vmatpush1.msra.mxu1 %v2807_v24 }
 0x71d   :  { %913 = vmatprep.subr.mxu1 %v2810_v26 }
 0x71e   :  { %914 = vmatpush1.msra.mxu1 %v2813_v28 }
 0x71f   :  { %915 = vmatprep.subr.mxu1 %v2816_v30 }
 0x720   :  { %916 = vmatpush1.msra.mxu1 %v2819_v32 }
 0x721   :  { %1131 = vmatprep.subr.mxu1 %v2776_v2 }
 0x7d1   :  { %v721_v51 = vpop.f32.mrf.mxu1 }
 0x7d2   :  { %v726_v53 = vadd.f32 %v721_v51, %v241_v48 }
 0x7d3   :  { %v723_v54 = vpop.f32.mrf.mxu1 }
 0x7d4   :  { %v727_v56 = vadd.f32 %v723_v54, %v243_v52  ;;  %v2326_v11 = vmul.f32 -1.442695, %v726_v53 }
 0x7d6   :  { %2411 = vtanh.f32 %v727_v56  ;;  %v2327_v25 = vmul.f32 -1.442695, %v727_v56 }
 0x7d7   :  { %2413 = vpow2.f32 %v2326_v11 }
 0x7e3   :  { %v2412_v57 = vpop.eup %2411 }
 0x7e4   :  { %743 = vrot.lane.b32.xlu1 %v2412_v57, %s2705_s3  ;;  %v2414_v13 = vpop.eup %2413 }
 0x7e5   :  { %v734_v15 = vadd.f32 1.0, %v2414_v13 }
 0x7e7   :  { %2415 = vrcp.f32 %v734_v15 }
 0x7f4   :  { %v2416_v17 = vpop.eup %2415 }
 0x7f5   :  { %v741_v58 = vmul.f32 %v2416_v17, %v636_v42  ;;  %v249_v42 = vadd.f32 %v2953_v61, %v2875_v40 }
 0x856   :  { %v744_v19 = vpop.permute.xlu1 %743 }
 0x857   :  { %v746_v2 = vmul.f32 %v2416_v17, %v744_v19 }
 0x859   :  { %748 = vrot.lane.b32.xlu0 %v746_v2, %s2705_s3 }
 0x8cb   :  { %v749_v21 = vpop.permute.xlu0 %748 }
 0x8cc   :  { %v751_v59 = vadd.f32 %v749_v21, %v741_v58 }
 0x8ce   :  { %2417 = vtanh.f32 %v751_v59 }
 0x8cf   :  { %2419 = vpow2.f32 %v2327_v25 }
 0x8db   :  { %v2418_v23 = vpop.eup %2417 }
 0x8dc   :  { %754 = vrot.lane.b32.xlu1 %v2418_v23, %s2705_s3  ;;  %v2420_v27 = vpop.eup %2419 }
 0x8dd   :  { %v735_v29 = vadd.f32 1.0, %v2420_v27  ;;  %v259_v27 = vadd.f32 %v2959_v1, %v2871_v39 }
 0x8df   :  { %2421 = vrcp.f32 %v735_v29 }
 0x8ec   :  { %v2422_v31 = vpop.eup %2421 }
 0x94e   :  { %v755_v33 = vpop.permute.xlu1 %754 }
 0x94f   :  { %v3000_v34 = vmul.f32 %v2422_v31, %v755_v33  ;;  %v261_v31 = vadd.f32 %v2961_v3, %v2875_v40 }
 0x951   :  { %2328 = vmatmul.mubr.msk.f32.vlgmr.msra.gmra.mxu0 %vm131_vm0, %v3000_v34  ;;  %758 = vst.msk [vmem:[#allocation3 + $0x18] sm:$0xff] %vm409_vm1, %v3000_v34 }
 0x952   :  { %1017 = vmatpush1.msra.mxu0 %v2779_v4  ;;  %1064 = vmatprep.mubr.f32.mxu0 %v2704_v0 }
 0x953   :  { %1018 = vmatprep.subr.mxu0 %v2781_v6 }
 0x954   :  { %1019 = vmatpush1.msra.mxu0 %v2784_v8 }
 0x955   :  { %1020 = vmatprep.subr.mxu0 %v2787_v10 }
 0x956   :  { %1021 = vmatpush1.msra.mxu0 %v2789_v12 }
 0x957   :  { %1022 = vmatprep.subr.mxu0 %v2792_v14 }
 0x958   :  { %1023 = vmatpush1.msra.mxu0 %v2795_v16 }
 0x959   :  { %1024 = vmatprep.subr.mxu0 %v2798_v18 }
 0x95a   :  { %1025 = vmatpush1.msra.mxu0 %v2801_v20 }
 0x95b   :  { %1026 = vmatprep.subr.mxu0 %v2804_v22 }
 0x95c   :  { %1027 = vmatpush1.msra.mxu0 %v2807_v24 }
 0x95d   :  { %1028 = vmatprep.subr.mxu0 %v2810_v26 }
 0x95e   :  { %1029 = vmatpush1.msra.mxu0 %v2813_v28 }
 0x95f   :  { %1030 = vmatprep.subr.mxu0 %v2816_v30 }
 0x960   :  { %1031 = vmatpush1.msra.mxu0 %v2819_v32 }
 0xa11   :  { %v836_v41 = vpop.f32.mrf.mxu0 }
 0xa12   :  { %v841_v43 = vadd.f32 %v836_v41, %v247_v37 }
 0xa13   :  { %v838_v44 = vpop.f32.mrf.mxu0 }
 0xa14   :  { %v842_v45 = vadd.f32 %v838_v44, %v249_v42  ;;  %v2329_v47 = vmul.f32 -1.442695, %v841_v43 }
 0xa16   :  { %2423 = vtanh.f32 %v842_v45  ;;  %v2330_v57 = vmul.f32 -1.442695, %v842_v45 }
 0xa17   :  { %2425 = vpow2.f32 %v2329_v47 }
 0xa23   :  { %v2424_v46 = vpop.eup %2423 }
 0xa24   :  { %858 = vrot.lane.b32.xlu0 %v2424_v46, %s2705_s3  ;;  %v2426_v49 = vpop.eup %2425 }
 0xa25   :  { %v849_v48 = vadd.f32 1.0, %v2426_v49 }
 0xa27   :  { %2427 = vrcp.f32 %v849_v48 }
 0xa34   :  { %v2428_v51 = vpop.eup %2427 }
 0xa35   :  { %v856_v60 = vmul.f32 %v2428_v51, %v751_v59 }
 0xa96   :  { %v859_v52 = vpop.permute.xlu0 %858 }
 0xa97   :  { %v861_v53 = vmul.f32 %v2428_v51, %v859_v52 }
 0xa99   :  { %863 = vrot.lane.b32.xlu1 %v861_v53, %s2705_s3 }
 0xb0b   :  { %v864_v54 = vpop.permute.xlu1 %863 }
 0xb0c   :  { %v866_v61 = vadd.f32 %v864_v54, %v856_v60 }
 0xb0e   :  { %2429 = vtanh.f32 %v866_v61 }
 0xb0f   :  { %2431 = vpow2.f32 %v2330_v57  ;;  %v265_v57 = vadd.f32 %v2963_v7, %v2871_v39 }
 0xb1b   :  { %v2430_v56 = vpop.eup %2429 }
 0xb1c   :  { %869 = vrot.lane.b32.xlu0 %v2430_v56, %s2705_s3  ;;  %v2432_v11 = vpop.eup %2431 }
 0xb1d   :  { %v850_v13 = vadd.f32 1.0, %v2432_v11 }
 0xb1f   :  { %2433 = vrcp.f32 %v850_v13  ;;  %v267_v13 = vadd.f32 %v2965_v9, %v2875_v40 }
 0xb2c   :  { %v2434_v15 = vpop.eup %2433 }
 0xb8e   :  { %v870_v17 = vpop.permute.xlu0 %869 }
 0xb8f   :  { %v3029_v19 = vmul.f32 %v2434_v15, %v870_v17 }
 0xb91   :  { %2331 = vmatmul.mubr.msk.f32.vlgmr.msra.gmra.mxu1 %vm131_vm0, %v3029_v19 }
 0xb92   :  { %1132 = vmatpush1.msra.mxu1 %v2779_v4  ;;  %1179 = vmatprep.mubr.f32.mxu1 %v2704_v0  ;;  %v253_v4 = vadd.f32 %v2955_v62, %v2871_v39 }
 0xb93   :  { %1133 = vmatprep.subr.mxu1 %v2781_v6 }
 0xb94   :  { %1134 = vmatpush1.msra.mxu1 %v2784_v8  ;;  %v255_v8 = vadd.f32 %v2957_v63, %v2875_v40 }
 0xb95   :  { %1135 = vmatprep.subr.mxu1 %v2787_v10 }
 0xb96   :  { %1136 = vmatpush1.msra.mxu1 %v2789_v12 }
 0xb97   :  { %1137 = vmatprep.subr.mxu1 %v2792_v14 }
 0xb98   :  { %1138 = vmatpush1.msra.mxu1 %v2795_v16 }
 0xb99   :  { %1139 = vmatprep.subr.mxu1 %v2798_v18 }
 0xb9a   :  { %1140 = vmatpush1.msra.mxu1 %v2801_v20 }
 0xb9b   :  { %1141 = vmatprep.subr.mxu1 %v2804_v22 }
 0xb9c   :  { %1142 = vmatpush1.msra.mxu1 %v2807_v24 }
 0xb9d   :  { %1143 = vmatprep.subr.mxu1 %v2810_v26 }
 0xb9e   :  { %1144 = vmatpush1.msra.mxu1 %v2813_v28 }
 0xb9f   :  { %1145 = vmatprep.subr.mxu1 %v2816_v30 }
 0xba0   :  { %1146 = vmatpush1.msra.mxu1 %v2819_v32 }
 0xc51   :  { %v951_v6 = vpop.f32.mrf.mxu1 }
 0xc52   :  { %v956_v10 = vadd.f32 %v951_v6, %v253_v4 }
 0xc53   :  { %v953_v12 = vpop.f32.mrf.mxu1 }
 0xc54   :  { %v957_v14 = vadd.f32 %v953_v12, %v255_v8  ;;  %v2332_v18 = vmul.f32 -1.442695, %v956_v10 }
 0xc56   :  { %2435 = vtanh.f32 %v957_v14  ;;  %v2333_v2 = vmul.f32 -1.442695, %v957_v14 }
 0xc57   :  { %2437 = vpow2.f32 %v2332_v18 }
 0xc63   :  { %v2436_v16 = vpop.eup %2435 }
 0xc64   :  { %973 = vrot.lane.b32.xlu1 %v2436_v16, %s2705_s3  ;;  %v2438_v20 = vpop.eup %2437 }
 0xc65   :  { %v964_v22 = vadd.f32 1.0, %v2438_v20  ;;  %v1265_v20 = vld [vmem:[#allocation10 + $0xf8] sm:$0xff] }
 0xc66   :  { %1278 = vmatprep.subr.mxu0 %v1265_v20 }
 0xc67   :  { %2439 = vrcp.f32 %v964_v22  ;;  %v1264_v22 = vld [vmem:[#allocation10 + $0xf0] sm:$0xff] }
 0xc74   :  { %v2440_v24 = vpop.eup %2439 }
 0xc75   :  { %v971_v30 = vmul.f32 %v2440_v24, %v866_v61 }
 0xcd6   :  { %v974_v26 = vpop.permute.xlu1 %973 }
 0xcd7   :  { %v976_v28 = vmul.f32 %v2440_v24, %v974_v26  ;;  %v1263_v24 = vld [vmem:[#allocation10 + $0xe8] sm:$0xff]  ;;  %v1262_v26 = vld [vmem:[#allocation10 + $0xe0] sm:$0xff] }
 0xcd9   :  { %978 = vrot.lane.b32.xlu0 %v976_v28, %s2705_s3  ;;  %v1261_v28 = vld [vmem:[#allocation10 + $0xd8] sm:$0xff] }
 0xd4b   :  { %v979_v32 = vpop.permute.xlu0 %978 }
 0xd4c   :  { %v981_v62 = vadd.f32 %v979_v32, %v971_v30  ;;  %v1260_v30 = vld [vmem:[#allocation10 + $0xd0] sm:$0xff]  ;;  %v1259_v32 = vld [vmem:[#allocation10 + $0xc8] sm:$0xff] }
 0xd4e   :  { %2441 = vtanh.f32 %v981_v62 }
 0xd4f   :  { %2443 = vpow2.f32 %v2333_v2  ;;  %v1257_v2 = vld [vmem:[#allocation10 + $0xb8] sm:$0xff] }
 0xd5b   :  { %v2442_v63 = vpop.eup %2441 }
 0xd5c   :  { %984 = vrot.lane.b32.xlu1 %v2442_v63, %s2705_s3  ;;  %v2444_v58 = vpop.eup %2443  ;;  %v3088_v63 = vld [vmem:[#allocation12 + $0x78] sm:$0xff] }
 0xd5d   :  { %v965_v21 = vadd.f32 1.0, %v2444_v58  ;;  %1441 = vmatprep.subr.mxu1 %v3088_v63  ;;  %v1256_v58 = vld [vmem:[#allocation10 + $0xb0] sm:$0xff] }
 0xd5f   :  { %2445 = vrcp.f32 %v965_v21  ;;  %v3094_v21 = vld [vmem:[#allocation12 + $0x68] sm:$0xff] }
 0xd6c   :  { %v2446_v59 = vpop.eup %2445 }
 0xdce   :  { %v985_v23 = vpop.permute.xlu1 %984 }
 0xdcf   :  { %v3056_v25 = vmul.f32 %v2446_v59, %v985_v23  ;;  %v3096_v59 = vld [vmem:[#allocation12 + $0x60] sm:$0xff]  ;;  %v1255_v23 = vld [vmem:[#allocation10 + $0xa8] sm:$0xff] }
 0xdd1   :  { %2334 = vmatmul.mubr.msk.f32.vlgmr.msra.gmra.mxu0 %vm131_vm0, %v3056_v25 }
 0xdd2   :  { %1342 = vmatprep.mubr.f32.mxu0 %v2704_v0  ;;  %1279 = vmatpush1.msra.mxu0 %v1264_v22 }
 0xdd3   :  { %1280 = vmatprep.subr.mxu0 %v1263_v24 }
 0xdd4   :  { %1281 = vmatpush1.msra.mxu0 %v1262_v26  ;;  %v1266_v26 = vld [vmem:[%s3417_s6] sm:$0x3]  ;;  %s2706_s6 = smov [#allocation13]  }
 0xdd5   :  { %1282 = vmatprep.subr.mxu0 %v1261_v28  ;;  %v3190_v28 = vrot.slane %v1266_v26, %v127_v38  ;;  %s2298_s29 = sshll.u32 %s2706_s6, 4  ;;  %s2299_s29 = int_to_ptr.vmem [resolvable:$true] %s2298_s29 }
 0xdd6   :  { %1283 = vmatpush1.msra.mxu0 %v1260_v30  ;;  %s2667_s30 = scalar_lea.vmem %s2299_s29, 128  ;;  %p2672_p12 = scmp.lt.s32.totalorder %s2299_s29, %s2299_s29 }
 0xdd7   :  { %1284 = vmatprep.subr.mxu0 %v1259_v32  ;;  %p2668_p11 = scmp.ne.s32.totalorder %s2299_s29, %s2667_s30  ;;  %p2673_p13 = scmp.lt.s32.totalorder %s2667_s30, %s2667_s30 }
 0xdd9   :  { %p2674_p0 = por %p2673_p13, %p2672_p12 }
 0xddb   :  { %p2675_p1 = pnand %p2674_p0, %p2668_p11 }
 0xe91   :  { %v1066_v29 = vpop.f32.mrf.mxu0 }
 0xe92   :  { %v1071_v33 = vadd.f32 %v1066_v29, %v259_v27  ;;  %v3099_v27 = vld [vmem:[#allocation12 + $0x58] sm:$0xff]  ;;  %v1254_v29 = vld [vmem:[#allocation10 + $0xa0] sm:$0xff] }
 0xe93   :  { %v1068_v37 = vpop.f32.mrf.mxu0 }
 0xe94   :  { %v1072_v41 = vadd.f32 %v1068_v37, %v261_v31  ;;  %v2335_v43 = vmul.f32 -1.442695, %v1071_v33  ;;  %v3102_v31 = vld [vmem:[#allocation12 + $0x50] sm:$0xff]  ;;  %v1253_v37 = vld [vmem:[#allocation10 + $0x98] sm:$0xff] }
 0xe96   :  { %2447 = vtanh.f32 %v1072_v41  ;;  %v2336_v52 = vmul.f32 -1.442695, %v1072_v41  ;;  %v3105_v41 = vld [vmem:[#allocation12 + $0x48] sm:$0xff] }
 0xe97   :  { %2449 = vpow2.f32 %v2335_v43  ;;  %v1251_v43 = vld [vmem:[#allocation10 + $0x88] sm:$0xff] }
 0xea3   :  { %v2448_v42 = vpop.eup %2447 }
 0xea4   :  { %1088 = vrot.lane.b32.xlu0 %v2448_v42, %s2705_s3  ;;  %v2450_v44 = vpop.eup %2449  ;;  %v1252_v42 = vld [vmem:[#allocation10 + $0x90] sm:$0xff] }
 0xea5   :  { %v1079_v45 = vadd.f32 1.0, %v2450_v44  ;;  %v1250_v44 = vld [vmem:[#allocation10 + $0x80] sm:$0xff] }
 0xea7   :  { %2451 = vrcp.f32 %v1079_v45  ;;  %v1249_v45 = vld [vmem:[#allocation10 + $0x78] sm:$0xff] }
 0xeb4   :  { %v2452_v46 = vpop.eup %2451 }
 0xeb5   :  { %v1086_v1 = vmul.f32 %v2452_v46, %v981_v62  ;;  %v1258_v62 = vld [vmem:[#allocation10 + $0xc0] sm:$0xff] }
 0xeb6   :  { %1285 = vmatpush1.msra.mxu0 %v1258_v62 }
 0xeb7   :  { %1286 = vmatprep.subr.mxu0 %v1257_v2 }
 0xeb8   :  { %1287 = vmatpush1.msra.mxu0 %v1256_v58 }
 0xeb9   :  { %1288 = vmatprep.subr.mxu0 %v1255_v23 }
 0xeba   :  { %1289 = vmatpush1.msra.mxu0 %v1254_v29 }
 0xebb   :  { %1290 = vmatprep.subr.mxu0 %v1253_v37 }
 0xebc   :  { %1291 = vmatpush1.msra.mxu0 %v1252_v42 }
 0xebd   :  { %1292 = vmatprep.subr.mxu0 %v1251_v43 }
 0xebe   :  { %1293 = vmatpush1.msra.mxu0 %v1250_v44 }
 0xebf   :  { %1294 = vmatprep.subr.mxu0 %v1249_v45 }
 0xf16   :  { %v1089_v47 = vpop.permute.xlu0 %1088 }
 0xf17   :  { %v1091_v49 = vmul.f32 %v2452_v46, %v1089_v47  ;;  %v1248_v46 = vld [vmem:[#allocation10 + $0x70] sm:$0xff]  ;;  %v1247_v47 = vld [vmem:[#allocation10 + $0x68] sm:$0xff] }
 0xf18   :  { %1295 = vmatpush1.msra.mxu0 %v1248_v46 }
 0xf19   :  { %1093 = vrot.lane.b32.xlu1 %v1091_v49, %s2705_s3  ;;  %v1246_v49 = vld [vmem:[#allocation10 + $0x60] sm:$0xff]  ;;  %1296 = vmatprep.subr.mxu0 %v1247_v47 }
 0xf1a   :  { %1297 = vmatpush1.msra.mxu0 %v1246_v49 }
 0xf8b   :  { %v1094_v48 = vpop.permute.xlu1 %1093 }
 0xf8c   :  { %v1096_v3 = vadd.f32 %v1094_v48, %v1086_v1  ;;  %v1245_v1 = vld [vmem:[#allocation10 + $0x58] sm:$0xff]  ;;  %v1244_v48 = vld [vmem:[#allocation10 + $0x50] sm:$0xff] }
 0xf8d   :  { %1298 = vmatprep.subr.mxu0 %v1245_v1 }
 0xf8e   :  { %2453 = vtanh.f32 %v1096_v3  ;;  %1299 = vmatpush1.msra.mxu0 %v1244_v48 }
 0xf8f   :  { %2455 = vpow2.f32 %v2336_v52 }
 0xf9b   :  { %v2454_v51 = vpop.eup %2453 }
 0xf9c   :  { %1099 = vrot.lane.b32.xlu0 %v2454_v51, %s2705_s3  ;;  %v2456_v53 = vpop.eup %2455 }
 0xf9d   :  { %v1080_v60 = vadd.f32 1.0, %v2456_v53 }
 0xf9f   :  { %2457 = vrcp.f32 %v1080_v60  ;;  %v1242_v60 = vld [vmem:[#allocation10 + $0x40] sm:$0xff] }
 0xfac   :  { %v2458_v54 = vpop.eup %2457 }
0x100e   :  { %v1100_v61 = vpop.permute.xlu0 %1099 }
0x100f   :  { %v3068_v56 = vmul.f32 %v2458_v54, %v1100_v61  ;;  %v3111_v54 = vld [vmem:[#allocation12 + $0x40] sm:$0xff]  ;;  %v1241_v61 = vld [vmem:[#allocation10 + $0x38] sm:$0xff] }
0x1011   :  { %2337 = vmatmul.mubr.msk.f32.vlgmr.msra.gmra.mxu1 %vm131_vm0, %v3068_v56 }
0x1012   :  { %1489 = vmatprep.mubr.f32.mxu1 %v2704_v0 }
0x10d1   :  { %v1181_v11 = vpop.f32.mrf.mxu1 }
0x10d2   :  { %v1186_v15 = vadd.f32 %v1181_v11, %v265_v57  ;;  %v3114_v57 = vld [vmem:[#allocation12 + $0x38] sm:$0xff]  ;;  %v1240_v11 = vld [vmem:[#allocation10 + $0x30] sm:$0xff] }
0x10d3   :  { %v1183_v17 = vpop.f32.mrf.mxu1 }
0x10d4   :  { %v3077_v4 = vadd.f32 %v1183_v17, %v267_v13  ;;  %v2338_v8 = vmul.f32 -1.442695, %v1186_v15  ;;  %v3117_v13 = vld [vmem:[#allocation12 + $0x30] sm:$0xff]  ;;  %v1239_v15 = vld [vmem:[#allocation10 + $0x28] sm:$0xff] }
0x10d5   :  { %v3120_v17 = vld [vmem:[#allocation12 + $0x28] sm:$0xff] }
0x10d6   :  { %2459 = vtanh.f32 %v3077_v4  ;;  %v2339_v51 = vmul.f32 -1.442695, %v3077_v4  ;;  %v1238_v4 = vld [vmem:[#allocation10 + $0x20] sm:$0xff] }
0x10d7   :  { %2461 = vpow2.f32 %v2338_v8  ;;  %v1237_v8 = vld [vmem:[#allocation10 + $0x18] sm:$0xff] }
0x10e3   :  { %v2460_v6 = vpop.eup %2459 }
0x10e4   :  { %1203 = vrot.lane.b32.xlu1 %v2460_v6, %s2705_s3  ;;  %v2462_v10 = vpop.eup %2461  ;;  %v3122_v6 = vld [vmem:[#allocation12 + $0x20] sm:$0xff] }
0x10e5   :  { %v1194_v12 = vadd.f32 1.0, %v2462_v10  ;;  %v3125_v10 = vld [vmem:[#allocation12 + $0x18] sm:$0xff] }
0x10e7   :  { %2463 = vrcp.f32 %v1194_v12  ;;  %v1236_v12 = vld [vmem:[#allocation10 + $0x10] sm:$0xff] }
0x10f4   :  { %v2464_v14 = vpop.eup %2463 }
0x10f5   :  { %v1201_v40 = vmul.f32 %v2464_v14, %v1096_v3  ;;  %v1243_v3 = vld [vmem:[#allocation10 + $0x48] sm:$0xff] }
0x10f6   :  { %1300 = vmatprep.subr.mxu0 %v1243_v3 }
0x10f7   :  { %1301 = vmatpush1.msra.mxu0 %v1242_v60 }
0x10f8   :  { %1302 = vmatprep.subr.mxu0 %v1241_v61 }
0x10f9   :  { %1303 = vmatpush1.msra.mxu0 %v1240_v11 }
0x10fa   :  { %1304 = vmatprep.subr.mxu0 %v1239_v15 }
0x10fb   :  { %1305 = vmatpush1.msra.mxu0 %v1238_v4 }
0x10fc   :  { %1306 = vmatprep.subr.mxu0 %v1237_v8 }
0x10fd   :  { %1307 = vmatpush1.msra.mxu0 %v1236_v12 }
0x1156   :  { %v1204_v39 = vpop.permute.xlu1 %1203 }
0x1157   :  { %v1206_v7 = vmul.f32 %v2464_v14, %v1204_v39  ;;  %v3128_v14 = vld [vmem:[#allocation12 + $0x10] sm:$0xff]  ;;  %v1235_v39 = vld [vmem:[#allocation10 + $0x8] sm:$0xff] }
0x1158   :  { %1308 = vmatprep.subr.mxu0 %v1235_v39 }
0x1159   :  { %1208 = vrot.lane.b32.xlu0 %v1206_v7, %s2705_s3  ;;  %v3130_v7 = vld [vmem:[#allocation12 + $0x8] sm:$0xff] }
0x115d   :  { %412 = vrot.lane.b32.xlu0 %v2887_v5, %s2705_s3 }
0x11cb   :  { %v1209_v9 = vpop.permute.xlu0 %1208 }
0x11cc   :  { %v1211_v16 = vadd.f32 %v1209_v9, %v1201_v40  ;;  %v1234_v40 = vld [vmem:[#allocation10] sm:$0xff] }
0x11cd   :  { %v3133_v9 = vld [vmem:[#allocation12] sm:$0xff]  ;;  %1309 = vmatpush1.msra.mxu0 %v1234_v40 }
0x11ce   :  { %2465 = vtanh.f32 %v1211_v16  ;;  %1765 = vmatprep.subr.mxu0 %v3088_v63 }
0x11cf   :  { %v413_v18 = vpop.permute.xlu0 %412  ;;  %2467 = vpow2.f32 %v2339_v51 }
0x11d0   :  { %416 = vst.msk [vmem:[#allocation3 + $0x38] sm:$0xff] %vm415_vm2, %v413_v18 }
0x11d1   :  { %420 = vst.msk [vmem:[#allocation3] sm:$0xff] %vm419_vm3, %v413_v18 }
0x11d2   :  { %418 = vst.msk [vmem:[#allocation3 + $0x38] sm:$0xff] %vm417_vm4, %v2887_v5  ;;  %v3091_v5 = vld [vmem:[#allocation12 + $0x70] sm:$0xff] }
0x11d3   :  { %1442 = vmatpush1.msra.mxu1 %v3091_v5 }
0x11d4   :  { %1443 = vmatprep.subr.mxu1 %v3094_v21 }
0x11d5   :  { %1444 = vmatpush1.msra.mxu1 %v3096_v59 }
0x11d6   :  { %1445 = vmatprep.subr.mxu1 %v3099_v27 }
0x11d7   :  { %1446 = vmatpush1.msra.mxu1 %v3102_v31 }
0x11d8   :  { %1447 = vmatprep.subr.mxu1 %v3105_v41 }
0x11d9   :  { %1448 = vmatpush1.msra.mxu1 %v3111_v54 }
0x11da   :  { %1449 = vmatprep.subr.mxu1 %v3114_v57 }
0x11db   :  { %v2466_v33 = vpop.eup %2465  ;;  %1450 = vmatpush1.msra.mxu1 %v3117_v13 }
0x11dc   :  { %1214 = vrot.lane.b32.xlu1 %v2466_v33, %s2705_s3  ;;  %v2468_v52 = vpop.eup %2467  ;;  %1451 = vmatprep.subr.mxu1 %v3120_v17  ;;  %v3198_v33 = vrot.slane %v1266_v26, %v123_v36 }
0x11dd   :  { %v1195_v53 = vadd.f32 1.0, %v2468_v52  ;;  %1452 = vmatpush1.msra.mxu1 %v3122_v6 }
0x11de   :  { %1453 = vmatprep.subr.mxu1 %v3125_v10 }
0x11df   :  { %2469 = vrcp.f32 %v1195_v53  ;;  %1454 = vmatpush1.msra.mxu1 %v3128_v14 }
0x11e0   :  { %1455 = vmatprep.subr.mxu1 %v3130_v7 }
0x11e1   :  { %1456 = vmatpush1.msra.mxu1 %v3133_v9 }
0x11e2   :  { %1490 = vmatmul.mubr.f32.vlgmr.msra.gmra.mxu1 %v2704_v0  ;;  %1549 = vmatprep.subr.mxu1 %v3088_v63 }
0x11e3   :  { %1550 = vmatpush1.msra.mxu1 %v3091_v5  ;;  %1597 = vmatprep.mubr.f32.mxu1 %v2704_v0 }
0x11e4   :  { %1551 = vmatprep.subr.mxu1 %v3094_v21 }
0x11e5   :  { %1552 = vmatpush1.msra.mxu1 %v3096_v59 }
0x11e6   :  { %1553 = vmatprep.subr.mxu1 %v3099_v27 }
0x11e7   :  { %1554 = vmatpush1.msra.mxu1 %v3102_v31 }
0x11e8   :  { %1555 = vmatprep.subr.mxu1 %v3105_v41 }
0x11e9   :  { %1556 = vmatpush1.msra.mxu1 %v3111_v54 }
0x11ea   :  { %1557 = vmatprep.subr.mxu1 %v3114_v57 }
0x11eb   :  { %1558 = vmatpush1.msra.mxu1 %v3117_v13 }
0x11ec   :  { %v2470_v16 = vpop.eup %2469  ;;  %1559 = vmatprep.subr.mxu1 %v3120_v17 }
0x11ed   :  { %1560 = vmatpush1.msra.mxu1 %v3122_v6 }
0x11ee   :  { %1561 = vmatprep.subr.mxu1 %v3125_v10 }
0x11ef   :  { %1562 = vmatpush1.msra.mxu1 %v3128_v14 }
0x11f0   :  { %1563 = vmatprep.subr.mxu1 %v3130_v7 }
0x11f1   :  { %1564 = vmatpush1.msra.mxu1 %v3133_v9 }
0x11f2   :  { %1657 = vmatprep.subr.mxu1 %v3088_v63 }
0x124e   :  { %v1215_v18 = vpop.permute.xlu1 %1214 }
0x124f   :  { %v3142_v20 = vmul.f32 %v2470_v16, %v1215_v18 }
0x1251   :  { %1218 = vst.msk [vmem:[#allocation3 + $0x38] sm:$0xff] %vm409_vm1, %v3142_v20  ;;  %1220 = vrot.lane.b32.xlu1 %v3142_v20, %s2705_s3 }
0x12a2   :  { %v1491_v32 = vpop.f32.mrf.mxu1 }
0x12a4   :  { %v1493_v58 = vpop.f32.mrf.mxu1 }
0x12c3   :  { %v1221_v22 = vpop.permute.xlu1 %1220 }
0x12c4   :  { %1223 = vst.msk [vmem:[#allocation3] sm:$0xff] %vm415_vm2, %v1221_v22 }
0x12c5   :  { %1225 = vst.msk [vmem:[#allocation3 + $0x38] sm:$0xff] %vm419_vm3, %v1221_v22 }
0x12c6   :  { %1224 = vst.msk [vmem:[#allocation3] sm:$0xff] %vm417_vm4, %v3142_v20 }
0x12cd   :  { %v1226_v24 = vld [vmem:[#allocation3] sm:$0xff] }
0x12ce   :  { %1343 = vmatmul.mubr.f32.vlgmr.msra.gmra.mxu0 %v1226_v24 }
0x12cf   :  { %1348 = vmatprep.mubr.f32.mxu0 %v2704_v0  ;;  %1766 = vmatpush1.msra.mxu0 %v3091_v5 }
0x12d0   :  { %1767 = vmatprep.subr.mxu0 %v3094_v21 }
0x12d1   :  { %1768 = vmatpush1.msra.mxu0 %v3096_v59 }
0x12d2   :  { %1769 = vmatprep.subr.mxu0 %v3099_v27 }
0x12d3   :  { %1770 = vmatpush1.msra.mxu0 %v3102_v31 }
0x12d4   :  { %1771 = vmatprep.subr.mxu0 %v3105_v41 }
0x12d5   :  { %1772 = vmatpush1.msra.mxu0 %v3111_v54 }
0x12d6   :  { %1773 = vmatprep.subr.mxu0 %v3114_v57 }
0x12d7   :  { %1774 = vmatpush1.msra.mxu0 %v3117_v13 }
0x12d8   :  { %1775 = vmatprep.subr.mxu0 %v3120_v17 }
0x12d9   :  { %1776 = vmatpush1.msra.mxu0 %v3122_v6 }
0x12da   :  { %1777 = vmatprep.subr.mxu0 %v3125_v10 }
0x12db   :  { %1778 = vmatpush1.msra.mxu0 %v3128_v14 }
0x12dc   :  { %1779 = vmatprep.subr.mxu0 %v3130_v7 }
0x12dd   :  { %1780 = vmatpush1.msra.mxu0 %v3133_v9 }
0x12de   :  { %1981 = vmatprep.subr.mxu0 %v3088_v63 }
0x138e   :  { %v1344_v30 = vpop.f32.mrf.mxu0 }
0x138f   :  { %v1345_v38 = vadd.f32 %v1344_v30, %v3198_v33 }
0x1390   :  { %v1346_v62 = vpop.f32.mrf.mxu0 }
0x1391   :  { %v1347_v2 = vadd.f32 %v1346_v62, %v3190_v28  ;;  %v1496_v37 = vadd.f32 %v1491_v32, %v1345_v38 }
0x1393   :  { %v1497_v23 = vadd.f32 %v1493_v58, %v1347_v2  ;;  %v2340_v42 = vmul.f32 -1.442695, %v1496_v37 }
0x1395   :  { %2471 = vtanh.f32 %v1497_v23  ;;  %v2341_v51 = vmul.f32 -1.442695, %v1497_v23 }
0x1396   :  { %2473 = vpow2.f32 %v2340_v42 }
0x13a2   :  { %v2472_v29 = vpop.eup %2471 }
0x13a3   :  { %1513 = vrot.lane.b32.xlu0 %v2472_v29, %s2705_s3  ;;  %v2474_v43 = vpop.eup %2473 }
0x13a4   :  { %v1504_v44 = vadd.f32 1.0, %v2474_v43 }
0x13a6   :  { %2475 = vrcp.f32 %v1504_v44 }
0x13a7   :  { %530 = vrot.lane.b32.xlu0 %v2928_v55, %s2705_s3 }
0x13b3   :  { %v2476_v45 = vpop.eup %2475 }
0x13b4   :  { %v1511_v35 = vmul.f32 0.0, %v2476_v45 }
0x1415   :  { %v1514_v46 = vpop.permute.xlu0 %1513 }
0x1416   :  { %v1516_v47 = vmul.f32 %v2476_v45, %v1514_v46 }
0x1418   :  { %1518 = vrot.lane.b32.xlu1 %v1516_v47, %s2705_s3 }
0x1419   :  { %v531_v49 = vpop.permute.xlu0 %530 }
0x141a   :  { %533 = vst.msk [vmem:[#allocation3 + $0x30] sm:$0xff] %vm415_vm2, %v531_v49 }
0x141b   :  { %535 = vst.msk [vmem:[#allocation3 + $0x8] sm:$0xff] %vm419_vm3, %v531_v49 }
0x141c   :  { %534 = vst.msk [vmem:[#allocation3 + $0x30] sm:$0xff] %vm417_vm4, %v2928_v55  ;;  %1105 = vrot.lane.b32.xlu1 %v3068_v56, %s2705_s3 }
0x141d   :  { %1103 = vst.msk [vmem:[#allocation3 + $0x30] sm:$0xff] %vm409_vm1, %v3068_v56 }
0x148a   :  { %v1519_v36 = vpop.permute.xlu1 %1518 }
0x148b   :  { %v3210_v1 = vadd.f32 %v1519_v36, %v1511_v35 }
0x148d   :  { %2477 = vtanh.f32 %v3210_v1 }
0x148e   :  { %v1106_v48 = vpop.permute.xlu1 %1105  ;;  %2479 = vpow2.f32 %v2341_v51 }
0x148f   :  { %1108 = vst.msk [vmem:[#allocation3 + $0x8] sm:$0xff] %vm415_vm2, %v1106_v48 }
0x1490   :  { %1110 = vst.msk [vmem:[#allocation3 + $0x30] sm:$0xff] %vm419_vm3, %v1106_v48 }
0x1491   :  { %1109 = vst.msk [vmem:[#allocation3 + $0x8] sm:$0xff] %vm417_vm4, %v3068_v56 }
0x1498   :  { %v1227_v55 = vld [vmem:[#allocation3 + $0x8] sm:$0xff] }
0x1499   :  { %1349 = vmatmul.mubr.f32.gmra.mxu0 %v1227_v55 }
0x149a   :  { %1354 = vmatprep.mubr.f32.mxu0 %v2704_v0  ;;  %v2478_v3 = vpop.eup %2477 }
0x149b   :  { %1524 = vrot.lane.b32.xlu0 %v2478_v3, %s2705_s3  ;;  %v2480_v52 = vpop.eup %2479 }
0x149c   :  { %v1505_v53 = vadd.f32 1.0, %v2480_v52 }
0x149e   :  { %2481 = vrcp.f32 %v1505_v53 }
0x14ab   :  { %v2482_v60 = vpop.eup %2481 }
0x150d   :  { %v1525_v61 = vpop.permute.xlu0 %1524 }
0x150e   :  { %v1527_v11 = vmul.f32 %v2482_v60, %v1525_v61 }
0x1510   :  { %2342 = vmatmul.mubr.msk.f32.vlgmr.msra.gmra.mxu1 %vm131_vm0, %v1527_v11 }
0x1511   :  { %1658 = vmatpush1.msra.mxu1 %v3091_v5  ;;  %1705 = vmatprep.mubr.f32.mxu1 %v2704_v0 }
0x1512   :  { %1659 = vmatprep.subr.mxu1 %v3094_v21 }
0x1513   :  { %1660 = vmatpush1.msra.mxu1 %v3096_v59 }
0x1514   :  { %1661 = vmatprep.subr.mxu1 %v3099_v27 }
0x1515   :  { %1662 = vmatpush1.msra.mxu1 %v3102_v31 }
0x1516   :  { %1663 = vmatprep.subr.mxu1 %v3105_v41 }
0x1517   :  { %1664 = vmatpush1.msra.mxu1 %v3111_v54 }
0x1518   :  { %1665 = vmatprep.subr.mxu1 %v3114_v57 }
0x1519   :  { %1666 = vmatpush1.msra.mxu1 %v3117_v13 }
0x151a   :  { %1667 = vmatprep.subr.mxu1 %v3120_v17 }
0x151b   :  { %1668 = vmatpush1.msra.mxu1 %v3122_v6 }
0x151c   :  { %1669 = vmatprep.subr.mxu1 %v3125_v10 }
0x151d   :  { %1670 = vmatpush1.msra.mxu1 %v3128_v14 }
0x151e   :  { %1671 = vmatprep.subr.mxu1 %v3130_v7 }
0x151f   :  { %1672 = vmatpush1.msra.mxu1 %v3133_v9 }
0x1520   :  { %1873 = vmatprep.subr.mxu1 %v3088_v63 }
0x1559   :  { %v1350_v56 = vpop.f32.mrf.mxu0 }
0x155a   :  { %v1351_v4 = vadd.f32 %v1350_v56, %v3198_v33 }
0x155b   :  { %v1352_v15 = vpop.f32.mrf.mxu0 }
0x155c   :  { %v1353_v12 = vadd.f32 %v1352_v15, %v3190_v28 }
0x15d0   :  { %v1599_v8 = vpop.f32.mrf.mxu1 }
0x15d1   :  { %v1604_v39 = vadd.f32 %v1599_v8, %v1351_v4 }
0x15d2   :  { %v1601_v40 = vpop.f32.mrf.mxu1 }
0x15d3   :  { %v1605_v16 = vadd.f32 %v1601_v40, %v1353_v12  ;;  %v2343_v22 = vmul.f32 -1.442695, %v1604_v39 }
0x15d5   :  { %2483 = vtanh.f32 %v1605_v16  ;;  %v2344_v42 = vmul.f32 -1.442695, %v1605_v16 }
0x15d6   :  { %2485 = vpow2.f32 %v2343_v22  ;;  %v1232_v22 = vld [vmem:[#allocation3 + $0x30] sm:$0xff] }
0x15e2   :  { %v2484_v18 = vpop.eup %2483 }
0x15e3   :  { %1621 = vrot.lane.b32.xlu1 %v2484_v18, %s2705_s3  ;;  %v2486_v24 = vpop.eup %2485 }
0x15e4   :  { %v1612_v26 = vadd.f32 1.0, %v2486_v24 }
0x15e6   :  { %2487 = vrcp.f32 %v1612_v26 }
0x15e7   :  { %645 = vrot.lane.b32.xlu1 %v2972_v50, %s2705_s3 }
0x15f3   :  { %v2488_v30 = vpop.eup %2487 }
0x15f4   :  { %v1619_v58 = vmul.f32 %v2488_v30, %v3210_v1 }
0x1655   :  { %v1622_v32 = vpop.permute.xlu1 %1621 }
0x1656   :  { %v1624_v62 = vmul.f32 %v2488_v30, %v1622_v32 }
0x1658   :  { %1626 = vrot.lane.b32.xlu0 %v1624_v62, %s2705_s3 }
0x1659   :  { %v646_v2 = vpop.permute.xlu1 %645 }
0x165a   :  { %648 = vst.msk [vmem:[#allocation3 + $0x28] sm:$0xff] %vm415_vm2, %v646_v2 }
0x165b   :  { %650 = vst.msk [vmem:[#allocation3 + $0x10] sm:$0xff] %vm419_vm3, %v646_v2 }
0x165c   :  { %649 = vst.msk [vmem:[#allocation3 + $0x28] sm:$0xff] %vm417_vm4, %v2972_v50  ;;  %990 = vrot.lane.b32.xlu0 %v3056_v25, %s2705_s3 }
0x165d   :  { %988 = vst.msk [vmem:[#allocation3 + $0x28] sm:$0xff] %vm409_vm1, %v3056_v25 }
0x16ca   :  { %v1627_v23 = vpop.permute.xlu0 %1626 }
0x16cb   :  { %v3252_v29 = vadd.f32 %v1627_v23, %v1619_v58 }
0x16cd   :  { %2489 = vtanh.f32 %v3252_v29 }
0x16ce   :  { %v991_v38 = vpop.permute.xlu0 %990  ;;  %2491 = vpow2.f32 %v2344_v42 }
0x16cf   :  { %993 = vst.msk [vmem:[#allocation3 + $0x10] sm:$0xff] %vm415_vm2, %v991_v38 }
0x16d0   :  { %995 = vst.msk [vmem:[#allocation3 + $0x28] sm:$0xff] %vm419_vm3, %v991_v38 }
0x16d1   :  { %994 = vst.msk [vmem:[#allocation3 + $0x10] sm:$0xff] %vm417_vm4, %v3056_v25 }
0x16d7   :  { %v1231_v18 = vld [vmem:[#allocation3 + $0x28] sm:$0xff] }
0x16d8   :  { %v1228_v50 = vld [vmem:[#allocation3 + $0x10] sm:$0xff] }
0x16d9   :  { %1355 = vmatmul.mubr.f32.gmra.mxu0 %v1228_v50 }
0x16da   :  { %1360 = vmatprep.mubr.f32.mxu0 %v2704_v0  ;;  %v2490_v37 = vpop.eup %2489 }
0x16db   :  { %1632 = vrot.lane.b32.xlu1 %v2490_v37, %s2705_s3  ;;  %v2492_v43 = vpop.eup %2491 }
0x16dc   :  { %v1613_v44 = vadd.f32 1.0, %v2492_v43 }
0x16de   :  { %2493 = vrcp.f32 %v1613_v44 }
0x16eb   :  { %v2494_v45 = vpop.eup %2493 }
0x174d   :  { %v1633_v46 = vpop.permute.xlu1 %1632 }
0x174e   :  { %v1635_v47 = vmul.f32 %v2494_v45, %v1633_v46 }
0x1750   :  { %2345 = vmatmul.mubr.msk.f32.vlgmr.msra.gmra.mxu1 %vm131_vm0, %v1635_v47 }
0x1751   :  { %1874 = vmatpush1.msra.mxu1 %v3091_v5  ;;  %1921 = vmatprep.mubr.f32.mxu1 %v2704_v0 }
0x1752   :  { %1875 = vmatprep.subr.mxu1 %v3094_v21 }
0x1753   :  { %1876 = vmatpush1.msra.mxu1 %v3096_v59 }
0x1754   :  { %1877 = vmatprep.subr.mxu1 %v3099_v27 }
0x1755   :  { %1878 = vmatpush1.msra.mxu1 %v3102_v31 }
0x1756   :  { %1879 = vmatprep.subr.mxu1 %v3105_v41 }
0x1757   :  { %1880 = vmatpush1.msra.mxu1 %v3111_v54 }
0x1758   :  { %1881 = vmatprep.subr.mxu1 %v3114_v57 }
0x1759   :  { %1882 = vmatpush1.msra.mxu1 %v3117_v13 }
0x175a   :  { %1883 = vmatprep.subr.mxu1 %v3120_v17 }
0x175b   :  { %1884 = vmatpush1.msra.mxu1 %v3122_v6 }
0x175c   :  { %1885 = vmatprep.subr.mxu1 %v3125_v10 }
0x175d   :  { %1886 = vmatpush1.msra.mxu1 %v3128_v14 }
0x175e   :  { %1887 = vmatprep.subr.mxu1 %v3130_v7 }
0x175f   :  { %1888 = vmatpush1.msra.mxu1 %v3133_v9 }
0x1760   :  { %2089 = vmatprep.subr.mxu1 %v3088_v63 }
0x1799   :  { %v1356_v25 = vpop.f32.mrf.mxu0 }
0x179a   :  { %v1357_v35 = vadd.f32 %v1356_v25, %v3198_v33 }
0x179b   :  { %v1358_v49 = vpop.f32.mrf.mxu0 }
0x179c   :  { %v1359_v1 = vadd.f32 %v1358_v49, %v3190_v28 }
0x1810   :  { %v1707_v36 = vpop.f32.mrf.mxu1 }
0x1811   :  { %v1712_v48 = vadd.f32 %v1707_v36, %v1357_v35 }
0x1812   :  { %v1709_v55 = vpop.f32.mrf.mxu1 }
0x1813   :  { %v1713_v3 = vadd.f32 %v1709_v55, %v1359_v1  ;;  %v2346_v52 = vmul.f32 -1.442695, %v1712_v48 }
0x1815   :  { %2495 = vtanh.f32 %v1713_v3  ;;  %v2347_v24 = vmul.f32 -1.442695, %v1713_v3 }
0x1816   :  { %2497 = vpow2.f32 %v2346_v52 }
0x1822   :  { %v2496_v51 = vpop.eup %2495 }
0x1823   :  { %1729 = vrot.lane.b32.xlu0 %v2496_v51, %s2705_s3  ;;  %v2498_v53 = vpop.eup %2497 }
0x1824   :  { %v1720_v60 = vadd.f32 1.0, %v2498_v53 }
0x1826   :  { %2499 = vrcp.f32 %v1720_v60 }
0x1827   :  { %760 = vrot.lane.b32.xlu0 %v3000_v34, %s2705_s3 }
0x1833   :  { %v2500_v61 = vpop.eup %2499 }
0x1834   :  { %v1727_v4 = vmul.f32 %v2500_v61, %v3252_v29 }
0x1895   :  { %v1730_v11 = vpop.permute.xlu0 %1729 }
0x1896   :  { %v1732_v56 = vmul.f32 %v2500_v61, %v1730_v11 }
0x1898   :  { %1734 = vrot.lane.b32.xlu1 %v1732_v56, %s2705_s3 }
0x1899   :  { %v761_v15 = vpop.permute.xlu0 %760 }
0x189a   :  { %763 = vst.msk [vmem:[#allocation3 + $0x20] sm:$0xff] %vm415_vm2, %v761_v15 }
0x189b   :  { %765 = vst.msk [vmem:[#allocation3 + $0x18] sm:$0xff] %vm419_vm3, %v761_v15 }
0x189c   :  { %764 = vst.msk [vmem:[#allocation3 + $0x20] sm:$0xff] %vm417_vm4, %v3000_v34  ;;  %875 = vrot.lane.b32.xlu1 %v3029_v19, %s2705_s3 }
0x189d   :  { %873 = vst.msk [vmem:[#allocation3 + $0x20] sm:$0xff] %vm409_vm1, %v3029_v19 }
0x190a   :  { %v1735_v8 = vpop.permute.xlu1 %1734 }
0x190b   :  { %v3294_v12 = vadd.f32 %v1735_v8, %v1727_v4 }
0x190d   :  { %2501 = vtanh.f32 %v3294_v12 }
0x190e   :  { %v876_v39 = vpop.permute.xlu1 %875  ;;  %2503 = vpow2.f32 %v2347_v24 }
0x190f   :  { %878 = vst.msk [vmem:[#allocation3 + $0x18] sm:$0xff] %vm415_vm2, %v876_v39 }
0x1910   :  { %880 = vst.msk [vmem:[#allocation3 + $0x20] sm:$0xff] %vm419_vm3, %v876_v39 }
0x1911   :  { %879 = vst.msk [vmem:[#allocation3 + $0x18] sm:$0xff] %vm417_vm4, %v3029_v19  ;;  %v1233_v19 = vld [vmem:[#allocation3 + $0x38] sm:$0xff] }
0x1917   :  { %v1230_v16 = vld [vmem:[#allocation3 + $0x20] sm:$0xff] }
0x1918   :  { %v1229_v34 = vld [vmem:[#allocation3 + $0x18] sm:$0xff] }
0x1919   :  { %1361 = vmatmul.mubr.f32.gmra.mxu0 %v1229_v34 }
0x191a   :  { %1366 = vmatprep.mubr.f32.mxu0 %v2704_v0  ;;  %v2502_v40 = vpop.eup %2501 }
0x191b   :  { %1740 = vrot.lane.b32.xlu0 %v2502_v40, %s2705_s3  ;;  %v2504_v26 = vpop.eup %2503 }
0x191c   :  { %v1721_v30 = vadd.f32 1.0, %v2504_v26 }
0x191d   :  { %1367 = vmatmul.mubr.f32.gmra.mxu0 %v1230_v16 }
0x191e   :  { %1372 = vmatprep.mubr.f32.mxu0 %v2704_v0  ;;  %2505 = vrcp.f32 %v1721_v30 }
0x1921   :  { %1373 = vmatmul.mubr.f32.gmra.mxu0 %v1231_v18 }
0x1922   :  { %1378 = vmatprep.mubr.f32.mxu0 %v2704_v0 }
0x1925   :  { %1379 = vmatmul.mubr.f32.gmra.mxu0 %v1232_v22 }
0x1926   :  { %1384 = vmatprep.mubr.f32.mxu0 %v2704_v0 }
0x1929   :  { %1385 = vmatmul.mubr.f32.gmra.mxu0 %v1233_v19 }
0x192a   :  { %1813 = vmatprep.mubr.f32.mxu0 %v2704_v0 }
0x192b   :  { %v2506_v32 = vpop.eup %2505 }
0x198d   :  { %v1741_v62 = vpop.permute.xlu0 %1740 }
0x198e   :  { %v1743_v2 = vmul.f32 %v2506_v32, %v1741_v62 }
0x1990   :  { %2348 = vmatmul.mubr.msk.f32.vlgmr.msra.gmra.mxu0 %vm131_vm0, %v1743_v2 }
0x1991   :  { %1982 = vmatpush1.msra.mxu0 %v3091_v5  ;;  %2029 = vmatprep.mubr.f32.mxu0 %v2704_v0 }
0x1992   :  { %1983 = vmatprep.subr.mxu0 %v3094_v21 }
0x1993   :  { %1984 = vmatpush1.msra.mxu0 %v3096_v59 }
0x1994   :  { %1985 = vmatprep.subr.mxu0 %v3099_v27 }
0x1995   :  { %1986 = vmatpush1.msra.mxu0 %v3102_v31 }
0x1996   :  { %1987 = vmatprep.subr.mxu0 %v3105_v41 }
0x1997   :  { %1988 = vmatpush1.msra.mxu0 %v3111_v54 }
0x1998   :  { %1989 = vmatprep.subr.mxu0 %v3114_v57 }
0x1999   :  { %1990 = vmatpush1.msra.mxu0 %v3117_v13 }
0x199a   :  { %1991 = vmatprep.subr.mxu0 %v3120_v17 }
0x199b   :  { %1992 = vmatpush1.msra.mxu0 %v3122_v6 }
0x199c   :  { %1993 = vmatprep.subr.mxu0 %v3125_v10 }
0x199d   :  { %1994 = vmatpush1.msra.mxu0 %v3128_v14 }
0x199e   :  { %1995 = vmatprep.subr.mxu0 %v3130_v7 }
0x199f   :  { %1996 = vmatpush1.msra.mxu0 %v3133_v9 }
0x19a0   :  { %2197 = vmatprep.subr.mxu0 %v3088_v63 }
0x19d9   :  { %v1362_v58 = vpop.f32.mrf.mxu0 }
0x19da   :  { %v1363_v46 = vadd.f32 %v1362_v58, %v3198_v33 }
0x19db   :  { %v1364_v23 = vpop.f32.mrf.mxu0 }
0x19dc   :  { %v1365_v63 = vadd.f32 %v1364_v23, %v3190_v28 }
0x19dd   :  { %v1368_v29 = vpop.f32.mrf.mxu0 }
0x19df   :  { %v1370_v38 = vpop.f32.mrf.mxu0 }
0x19e0   :  { %v1371_v16 = vadd.f32 %v1370_v38, %v3190_v28 }
0x19e1   :  { %v3325_v50 = vpop.f32.mrf.mxu0 }
0x19e3   :  { %v3327_v37 = vpop.f32.mrf.mxu0 }
0x19e5   :  { %v3329_v42 = vpop.f32.mrf.mxu0 }
0x19e7   :  { %v3331_v43 = vpop.f32.mrf.mxu0 }
0x19e9   :  { %v3333_v44 = vpop.f32.mrf.mxu0 }
0x19eb   :  { %v3335_v45 = vpop.f32.mrf.mxu0 }
0x1a50   :  { %v1815_v47 = vpop.f32.mrf.mxu0 }
0x1a51   :  { %v1820_v25 = vadd.f32 %v1815_v47, %v1363_v46 }
0x1a52   :  { %v1817_v49 = vpop.f32.mrf.mxu0 }
0x1a53   :  { %v1821_v35 = vadd.f32 %v1817_v49, %v1365_v63  ;;  %v2349_v1 = vmul.f32 -1.442695, %v1820_v25 }
0x1a55   :  { %2507 = vtanh.f32 %v1821_v35  ;;  %v2350_v56 = vmul.f32 -1.442695, %v1821_v35 }
0x1a56   :  { %2509 = vpow2.f32 %v2349_v1 }
0x1a62   :  { %v2508_v36 = vpop.eup %2507 }
0x1a63   :  { %1837 = vrot.lane.b32.xlu1 %v2508_v36, %s2705_s3  ;;  %v2510_v48 = vpop.eup %2509 }
0x1a64   :  { %v1828_v55 = vadd.f32 1.0, %v2510_v48 }
0x1a66   :  { %2511 = vrcp.f32 %v1828_v55 }
0x1a73   :  { %v2512_v3 = vpop.eup %2511 }
0x1a74   :  { %v1835_v53 = vmul.f32 %v2512_v3, %v3294_v12  ;;  %v1369_v12 = vadd.f32 %v1368_v29, %v3198_v33 }
0x1ad5   :  { %v1838_v51 = vpop.permute.xlu1 %1837 }
0x1ad6   :  { %v1840_v52 = vmul.f32 %v2512_v3, %v1838_v51 }
0x1ad8   :  { %1842 = vrot.lane.b32.xlu0 %v1840_v52, %s2705_s3  ;;  %v1381_v52 = vadd.f32 %v3329_v42, %v3198_v33 }
0x1b4a   :  { %v1843_v60 = vpop.permute.xlu0 %1842 }
0x1b4b   :  { %v1845_v61 = vadd.f32 %v1843_v60, %v1835_v53  ;;  %v1383_v60 = vadd.f32 %v3331_v43, %v3190_v28 }
0x1b4d   :  { %2513 = vtanh.f32 %v1845_v61 }
0x1b4e   :  { %2515 = vpow2.f32 %v2350_v56 }
0x1b5a   :  { %v2514_v11 = vpop.eup %2513 }
0x1b5b   :  { %1848 = vrot.lane.b32.xlu1 %v2514_v11, %s2705_s3  ;;  %v2516_v15 = vpop.eup %2515 }
0x1b5c   :  { %v1829_v4 = vadd.f32 1.0, %v2516_v15 }
0x1b5e   :  { %2517 = vrcp.f32 %v1829_v4 }
0x1b6b   :  { %v2518_v8 = vpop.eup %2517 }
0x1bcd   :  { %v1849_v39 = vpop.permute.xlu1 %1848 }
0x1bce   :  { %v1851_v34 = vmul.f32 %v2518_v8, %v1849_v39 }
0x1bd0   :  { %2351 = vmatmul.mubr.msk.f32.vlgmr.msra.gmra.mxu1 %vm131_vm0, %v1851_v34 }
0x1bd1   :  { %2090 = vmatpush1.msra.mxu1 %v3091_v5  ;;  %2137 = vmatprep.mubr.f32.mxu1 %v2704_v0 }
0x1bd2   :  { %2091 = vmatprep.subr.mxu1 %v3094_v21 }
0x1bd3   :  { %2092 = vmatpush1.msra.mxu1 %v3096_v59 }
0x1bd4   :  { %2093 = vmatprep.subr.mxu1 %v3099_v27 }
0x1bd5   :  { %2094 = vmatpush1.msra.mxu1 %v3102_v31 }
0x1bd6   :  { %2095 = vmatprep.subr.mxu1 %v3105_v41 }
0x1bd7   :  { %2096 = vmatpush1.msra.mxu1 %v3111_v54 }
0x1bd8   :  { %2097 = vmatprep.subr.mxu1 %v3114_v57 }
0x1bd9   :  { %2098 = vmatpush1.msra.mxu1 %v3117_v13 }
0x1bda   :  { %2099 = vmatprep.subr.mxu1 %v3120_v17 }
0x1bdb   :  { %2100 = vmatpush1.msra.mxu1 %v3122_v6 }
0x1bdc   :  { %2101 = vmatprep.subr.mxu1 %v3125_v10 }
0x1bdd   :  { %2102 = vmatpush1.msra.mxu1 %v3128_v14 }
0x1bde   :  { %2103 = vmatprep.subr.mxu1 %v3130_v7 }
0x1bdf   :  { %2104 = vmatpush1.msra.mxu1 %v3133_v9 }
0x1c90   :  { %v1923_v40 = vpop.f32.mrf.mxu1 }
0x1c91   :  { %v1928_v18 = vadd.f32 %v1923_v40, %v1369_v12 }
0x1c92   :  { %v1925_v22 = vpop.f32.mrf.mxu1 }
0x1c93   :  { %v1929_v19 = vadd.f32 %v1925_v22, %v1371_v16  ;;  %v2352_v26 = vmul.f32 -1.442695, %v1928_v18 }
0x1c95   :  { %2519 = vtanh.f32 %v1929_v19  ;;  %v2353_v47 = vmul.f32 -1.442695, %v1929_v19 }
0x1c96   :  { %2521 = vpow2.f32 %v2352_v26 }
0x1ca2   :  { %v2520_v24 = vpop.eup %2519 }
0x1ca3   :  { %1945 = vrot.lane.b32.xlu0 %v2520_v24, %s2705_s3  ;;  %v2522_v30 = vpop.eup %2521 }
0x1ca4   :  { %v1936_v32 = vadd.f32 1.0, %v2522_v30 }
0x1ca6   :  { %2523 = vrcp.f32 %v1936_v32 }
0x1cb3   :  { %v2524_v62 = vpop.eup %2523 }
0x1cb4   :  { %v1943_v23 = vmul.f32 %v2524_v62, %v1845_v61 }
0x1d15   :  { %v1946_v2 = vpop.permute.xlu0 %1945 }
0x1d16   :  { %v1948_v58 = vmul.f32 %v2524_v62, %v1946_v2  ;;  %v1387_v62 = vadd.f32 %v3333_v44, %v3198_v33 }
0x1d18   :  { %1950 = vrot.lane.b32.xlu1 %v1948_v58, %s2705_s3  ;;  %v1389_v58 = vadd.f32 %v3335_v45, %v3190_v28 }
0x1d8a   :  { %v1951_v29 = vpop.permute.xlu1 %1950 }
0x1d8b   :  { %v1953_v38 = vadd.f32 %v1951_v29, %v1943_v23 }
0x1d8d   :  { %2525 = vtanh.f32 %v1953_v38 }
0x1d8e   :  { %2527 = vpow2.f32 %v2353_v47 }
0x1d9a   :  { %v2526_v46 = vpop.eup %2525 }
0x1d9b   :  { %1956 = vrot.lane.b32.xlu0 %v2526_v46, %s2705_s3  ;;  %v2528_v63 = vpop.eup %2527 }
0x1d9c   :  { %v1937_v25 = vadd.f32 1.0, %v2528_v63 }
0x1d9e   :  { %2529 = vrcp.f32 %v1937_v25 }
0x1dab   :  { %v2530_v49 = vpop.eup %2529 }
0x1e0d   :  { %v1957_v35 = vpop.permute.xlu0 %1956 }
0x1e0e   :  { %v1959_v36 = vmul.f32 %v2530_v49, %v1957_v35 }
0x1e10   :  { %2354 = vmatmul.mubr.msk.f32.vlgmr.msra.gmra.mxu0 %vm131_vm0, %v1959_v36 }
0x1e11   :  { %2198 = vmatpush1.msra.mxu0 %v3091_v5  ;;  %2245 = vmatprep.mubr.f32.mxu0 %v2704_v0  ;;  %v1375_v0 = vadd.f32 %v3325_v50, %v3198_v33 }
0x1e12   :  { %2199 = vmatprep.subr.mxu0 %v3094_v21  ;;  %v1377_v21 = vadd.f32 %v3327_v37, %v3190_v28 }
0x1e13   :  { %2200 = vmatpush1.msra.mxu0 %v3096_v59 }
0x1e14   :  { %2201 = vmatprep.subr.mxu0 %v3099_v27 }
0x1e15   :  { %2202 = vmatpush1.msra.mxu0 %v3102_v31 }
0x1e16   :  { %2203 = vmatprep.subr.mxu0 %v3105_v41 }
0x1e17   :  { %2204 = vmatpush1.msra.mxu0 %v3111_v54 }
0x1e18   :  { %2205 = vmatprep.subr.mxu0 %v3114_v57 }
0x1e19   :  { %2206 = vmatpush1.msra.mxu0 %v3117_v13 }
0x1e1a   :  { %2207 = vmatprep.subr.mxu0 %v3120_v17 }
0x1e1b   :  { %2208 = vmatpush1.msra.mxu0 %v3122_v6 }
0x1e1c   :  { %2209 = vmatprep.subr.mxu0 %v3125_v10 }
0x1e1d   :  { %2210 = vmatpush1.msra.mxu0 %v3128_v14 }
0x1e1e   :  { %2211 = vmatprep.subr.mxu0 %v3130_v7 }
0x1e1f   :  { %2212 = vmatpush1.msra.mxu0 %v3133_v9 }
0x1ed0   :  { %v2031_v5 = vpop.f32.mrf.mxu0 }
0x1ed1   :  { %v2036_v59 = vadd.f32 %v2031_v5, %v1375_v0 }
0x1ed2   :  { %v2033_v27 = vpop.f32.mrf.mxu0 }
0x1ed3   :  { %v2037_v31 = vadd.f32 %v2033_v27, %v1377_v21  ;;  %v2355_v54 = vmul.f32 -1.442695, %v2036_v59 }
0x1ed5   :  { %2531 = vtanh.f32 %v2037_v31  ;;  %v2356_v37 = vmul.f32 -1.442695, %v2037_v31 }
0x1ed6   :  { %2533 = vpow2.f32 %v2355_v54 }
0x1ee2   :  { %v2532_v41 = vpop.eup %2531 }
0x1ee3   :  { %2053 = vrot.lane.b32.xlu1 %v2532_v41, %s2705_s3  ;;  %v2534_v57 = vpop.eup %2533 }
0x1ee4   :  { %v2044_v13 = vadd.f32 1.0, %v2534_v57 }
0x1ee6   :  { %2535 = vrcp.f32 %v2044_v13 }
0x1ef3   :  { %v2536_v17 = vpop.eup %2535 }
0x1ef4   :  { %v2051_v14 = vmul.f32 %v2536_v17, %v1953_v38 }
0x1f55   :  { %v2054_v6 = vpop.permute.xlu1 %2053 }
0x1f56   :  { %v2056_v10 = vmul.f32 %v2536_v17, %v2054_v6 }
0x1f58   :  { %2058 = vrot.lane.b32.xlu0 %v2056_v10, %s2705_s3 }
0x1fca   :  { %v2059_v7 = vpop.permute.xlu0 %2058 }
0x1fcb   :  { %v2061_v9 = vadd.f32 %v2059_v7, %v2051_v14 }
0x1fcd   :  { %2537 = vtanh.f32 %v2061_v9 }
0x1fce   :  { %2539 = vpow2.f32 %v2356_v37 }
0x1fda   :  { %v2538_v50 = vpop.eup %2537 }
0x1fdb   :  { %2064 = vrot.lane.b32.xlu1 %v2538_v50, %s2705_s3  ;;  %v2540_v1 = vpop.eup %2539 }
0x1fdc   :  { %v2045_v48 = vadd.f32 1.0, %v2540_v1 }
0x1fde   :  { %2541 = vrcp.f32 %v2045_v48 }
0x1feb   :  { %v2542_v55 = vpop.eup %2541 }
0x204d   :  { %v2065_v3 = vpop.permute.xlu1 %2064 }
0x204e   :  { %v2067_v51 = vmul.f32 %v2542_v55, %v2065_v3 }
0x2050   :  { %2357 = vmatmul.mubr.msk.f32.vlgmr.msra.gmra.mxu1 %vm131_vm0, %v2067_v51 }
0x2110   :  { %v2139_v53 = vpop.f32.mrf.mxu1 }
0x2111   :  { %v2144_v61 = vadd.f32 %v2139_v53, %v1381_v52 }
0x2112   :  { %v2141_v11 = vpop.f32.mrf.mxu1 }
0x2113   :  { %v2145_v56 = vadd.f32 %v2141_v11, %v1383_v60  ;;  %v2358_v4 = vmul.f32 -1.442695, %v2144_v61 }
0x2115   :  { %2543 = vtanh.f32 %v2145_v56  ;;  %v2359_v22 = vmul.f32 -1.442695, %v2145_v56 }
0x2116   :  { %2545 = vpow2.f32 %v2358_v4 }
0x2122   :  { %v2544_v15 = vpop.eup %2543 }
0x2123   :  { %2161 = vrot.lane.b32.xlu0 %v2544_v15, %s2705_s3  ;;  %v2546_v8 = vpop.eup %2545 }
0x2124   :  { %v2152_v39 = vadd.f32 1.0, %v2546_v8 }
0x2126   :  { %2547 = vrcp.f32 %v2152_v39 }
0x2133   :  { %v2548_v34 = vpop.eup %2547 }
0x2134   :  { %v2159_v42 = vmul.f32 %v2548_v34, %v2061_v9 }
0x2195   :  { %v2162_v12 = vpop.permute.xlu0 %2161 }
0x2196   :  { %v2164_v40 = vmul.f32 %v2548_v34, %v2162_v12 }
0x2198   :  { %2166 = vrot.lane.b32.xlu1 %v2164_v40, %s2705_s3 }
0x220a   :  { %v2167_v16 = vpop.permute.xlu1 %2166 }
0x220b   :  { %v2169_v43 = vadd.f32 %v2167_v16, %v2159_v42 }
0x220d   :  { %2549 = vtanh.f32 %v2169_v43 }
0x220e   :  { %2551 = vpow2.f32 %v2359_v22 }
0x221a   :  { %v2550_v18 = vpop.eup %2549 }
0x221b   :  { %2172 = vrot.lane.b32.xlu0 %v2550_v18, %s2705_s3  ;;  %v2552_v19 = vpop.eup %2551 }
0x221c   :  { %v2153_v24 = vadd.f32 1.0, %v2552_v19 }
0x221e   :  { %2553 = vrcp.f32 %v2153_v24 }
0x222b   :  { %v2554_v26 = vpop.eup %2553 }
0x228d   :  { %v2173_v30 = vpop.permute.xlu0 %2172 }
0x228e   :  { %v2175_v32 = vmul.f32 %v2554_v26, %v2173_v30 }
0x2290   :  { %2360 = vmatmul.mubr.msk.f32.vlgmr.msra.gmra.mxu0 %vm131_vm0, %v2175_v32 }
0x2350   :  { %v2247_v2 = vpop.f32.mrf.mxu0 }
0x2351   :  { %v2252_v23 = vadd.f32 %v2247_v2, %v1387_v62 }
0x2352   :  { %v2249_v29 = vpop.f32.mrf.mxu0 }
0x2353   :  { %v2253_v38 = vadd.f32 %v2249_v29, %v1389_v58  ;;  %v2361_v47 = vmul.f32 -1.442695, %v2252_v23 }
0x2355   :  { %2555 = vtanh.f32 %v2253_v38  ;;  %v2362_v0 = vmul.f32 -1.442695, %v2253_v38 }
0x2356   :  { %2557 = vpow2.f32 %v2361_v47 }
0x2362   :  { %v2556_v46 = vpop.eup %2555 }
0x2363   :  { %2269 = vrot.lane.b32.xlu1 %v2556_v46, %s2705_s3  ;;  %v2558_v63 = vpop.eup %2557 }
0x2364   :  { %v2260_v25 = vadd.f32 1.0, %v2558_v63 }
0x2366   :  { %2559 = vrcp.f32 %v2260_v25 }
0x2373   :  { %v2560_v49 = vpop.eup %2559 }
0x2374   :  { %v2267_v33 = vmul.f32 %v2560_v49, %v2169_v43 }
0x23d5   :  { %v2270_v35 = vpop.permute.xlu1 %2269 }
0x23d6   :  { %v2272_v36 = vmul.f32 %v2560_v49, %v2270_v35 }
0x23d8   :  { %2274 = vrot.lane.b32.xlu0 %v2272_v36, %s2705_s3 }
0x244a   :  { %v2275_v44 = vpop.permute.xlu0 %2274 }
0x244b   :  { %v2277_v28 = vadd.f32 %v2275_v44, %v2267_v33 }
0x244d   :  { %2561 = vtanh.f32 %v2277_v28 }
0x244e   :  { %2563 = vpow2.f32 %v2362_v0 }
0x245a   :  { %v2562_v45 = vpop.eup %2561 }
0x245b   :  { %2280 = vrot.lane.b32.xlu1 %v2562_v45, %s2705_s3  ;;  %v2564_v5 = vpop.eup %2563 }
0x245c   :  { %v2261_v21 = vadd.f32 1.0, %v2564_v5 }
0x245e   :  { %2565 = vrcp.f32 %v2261_v21 }
0x246b   :  { %v2566_v59 = vpop.eup %2565 }
0x24cd   :  { %v2281_v27 = vpop.permute.xlu1 %2280 }
0x24ce   :  { %v2283_v31 = vmul.f32 %v2566_v59, %v2281_v27 }
0x24d0   :  { %2285 = vrot.lane.b32.xlu0 %v2283_v31, %s2705_s3 }
0x2542   :  { %v2286_v41 = vpop.permute.xlu0 %2285 }
0x2543   :  { %v2288_v54 = vsel %vm131_vm0, %v3142_v20, %v2286_v41 }
0x2544   :  { %v2290_v57 = vsel %vm2289_vm5, %v2288_v54, %v2286_v41 }
0x2545   :  { %2291 = vst [vmem:[#allocation13] sm:$0xff] %v2290_v57 }
0x2546   :  { %2678 = shalt.err (!%p2675_p1)
}
0x2547   :  { %2301 = dma.vmem_to_hbm [thread:$0]  %s2299_s29, 128, %s3418_s7, [#allocation6]  }
0x2548   :  { %2693 = dma.done.wait [#allocation6], 128  }
0x2549   :  { %2694 = vsyncadd [#allocation6], 4294967168 }
0x254a   :  { %2305 = vsyncpa [#allocation5], 1 }
0x254b   :  { %2306 = vsyncpa [#allocation8], 1 }
0x254c   :  { %2307 = vsyncpa [#allocation11], 1 }
0x254d   :  { %2308 = vsyncpa [#allocation6], 1 }

</bundles_post_ra>
